<compile_context>
chip_gen: v6e
topology: v6e:2x2x1
jax: 0.10.0
libtpu: 0.0.40
codegen_flags: <defaults>
</compile_context>

<pallas_src>
import functools

import jax
import jax.numpy as jnp
from jax.experimental import pallas as pl
from jax.experimental.pallas import tpu as pltpu

IN_FEATURES = 13
LAYER_SIZES = [(13, 24), (24, 48), (48, 48), (48, 48), (48, 1)]

# Packed weight blob layout (rows x 128 lanes, bfloat16):
#   layer 1 : rows [  0,  16)  -> W1 (13x24) in rows 0..12
#   layer 2 : rows [ 16,  80)  -> W2 (24x48) in rows 0..23
#   layer 3 : rows [ 80, 144)  -> W3 (48x48) in rows 0..47
#   layer 4 : rows [144, 208)  -> W4 (48x48) in rows 0..47
#   out     : rows [208, 272)  -> W5 (48x1)  in rows 0..47, col 0
# Biases live in a separate (8, 128) f32 array: row i == bias of layer i+1.
_L1_ROWS = 16
_BLK_ROWS = 64
_HIDDEN_OFFSETS = (16, 80, 144)          # mish layers 2..4
_OUT_OFFSET = 208
_BLOB_ROWS = _L1_ROWS + 4 * _BLK_ROWS    # 272 (multiple of 16 -> bf16 aligned)


def _round_up(n, m):
    return ((n + m - 1) // m) * m


def _mish_fast(z):
    """Single-exp Mish: z * tanh(softplus(z)) == z * u(u+2)/(u(u+2)+2), u=exp(z).

    The min(z, 20) clamp both prevents exp overflow and makes t/(t+2) round
    to 1.0 for large z, so mish(z) -> z there with no extra select needed."""
    zc = jnp.minimum(z, 20.0)
    u = jnp.exp(zc)
    t = u * (u + 2.0)
    return z * t * pl.reciprocal(t + 2.0, approx=True)


def mlp_kernel(x_ref, w_ref, b_ref, o_ref):
    """Fused 5-layer MLP forward for one batch tile.

    x_ref : (tile, 13)  f32   -- raw features (batch tile)
    w_ref : (272, 128)  bf16  -- packed, padded weights (whole array in VMEM)
    b_ref : (8, 128)    f32   -- row i = bias of layer i+1 (whole array in VMEM)
    o_ref : (tile, 1)   f32
    """
    # layer 1: (tile,13) @ (13,128) on the MXU, bf16 operands / f32 accumulate
    xb = x_ref[...].astype(jnp.bfloat16)
    z = jnp.dot(xb, w_ref[0:IN_FEATURES, :], preferred_element_type=jnp.float32)
    h = _mish_fast(z + b_ref[0:1, :])

    # layers 2..4: contract the first 64 lanes (cols >= out_f are exactly 0)
    for li, off in enumerate(_HIDDEN_OFFSETS, start=1):
        z = jnp.dot(h[:, :_BLK_ROWS].astype(jnp.bfloat16),
                    w_ref[off:off + _BLK_ROWS, :],
                    preferred_element_type=jnp.float32)
        h = _mish_fast(z + b_ref[li:li + 1, :])

    # output layer (no activation); result lives in lane 0
    z = jnp.dot(h[:, :_BLK_ROWS].astype(jnp.bfloat16),
                w_ref[_OUT_OFFSET:_OUT_OFFSET + _BLK_ROWS, :],
                preferred_element_type=jnp.float32)
    out = z + b_ref[4:5, :]
    o_ref[...] = out[:, 0:1].astype(o_ref.dtype)


def init_params(key, bias_init="zeros"):
    """xavier_uniform weights; zero biases match the PyTorch init, but
    bias_init='random' lets the test exercise the bias-add path."""
    params = []
    for (in_f, out_f) in LAYER_SIZES:
        key, wk, bk = jax.random.split(key, 3)
        bound = (6.0 / (in_f + out_f)) ** 0.5
        w = jax.random.uniform(wk, (in_f, out_f), jnp.float32, -bound, bound)
        if bias_init == "random":
            b = jax.random.uniform(bk, (out_f,), jnp.float32, -0.1, 0.1)
        else:
            b = jnp.zeros((out_f,), jnp.float32)
        params.append((w, b))
    return params


def pack_params(params):
    """Pack the 5 weight matrices into one (272,128) bf16 blob and the 5
    biases into an (8,128) f32 array (row i = bias of layer i+1)."""
    blocks = []
    w1, _ = params[0]
    blk = jnp.zeros((_L1_ROWS, 128), jnp.float32)
    blk = blk.at[:w1.shape[0], :w1.shape[1]].set(w1)
    blocks.append(blk)
    for (w, _) in params[1:]:
        in_f, out_f = w.shape
        blk = jnp.zeros((_BLK_ROWS, 128), jnp.float32)
        blk = blk.at[:in_f, :out_f].set(w)
        blocks.append(blk)
    w_blob = jnp.concatenate(blocks, axis=0).astype(jnp.bfloat16)  # (272,128)

    b_blob = jnp.zeros((8, 128), jnp.float32)
    for i, (_, b) in enumerate(params):
        b_blob = b_blob.at[i, :b.shape[0]].set(b)
    return w_blob, b_blob


@functools.partial(jax.jit, static_argnames=("tile_b",))
def features13_nn_forward(x, w_blob, b_blob, tile_b=512):
    B, F = x.shape
    assert F == IN_FEATURES
    x = x.astype(jnp.float32)

    # Batch tile: multiple of 8.  For small batches split in two so both v7x
    # TensorCores get work (grid >= 2); for large batches use tile_b.
    if B > tile_b:
        tile = _round_up(tile_b, 8)
    else:
        tile = max(8, _round_up((B + 1) // 2, 8))
    B_pad = _round_up(B, tile)
    grid = B_pad // tile

    if B_pad != B:                       # pad the batch dim only
        x = jnp.pad(x, ((0, B_pad - B), (0, 0)))

    macs_per_row = sum(i * o for (i, o) in LAYER_SIZES)           # 6120
    act_per_row = sum(o for (_, o) in LAYER_SIZES[:-1])           # 168
    cost = pl.CostEstimate(
        flops=2 * macs_per_row * B_pad,
        transcendentals=2 * act_per_row * B_pad,                  # exp + rcp
        bytes_accessed=(B_pad * (IN_FEATURES * 4 + 4)
                        + _BLOB_ROWS * 128 * 2 + 8 * 128 * 4),
    )

    out = pl.pallas_call(
        mlp_kernel,
        out_shape=jax.ShapeDtypeStruct((B_pad, 1), jnp.float32),
        grid_spec=pltpu.PrefetchScalarGridSpec(
            num_scalar_prefetch=0,
            grid=(grid,),
            in_specs=[
                pl.BlockSpec((tile, IN_FEATURES), lambda i: (i, 0)),
                # whole arrays resident in VMEM, copied once, no double buffer
                pl.BlockSpec(memory_space=pltpu.MemorySpace.VMEM),
                pl.BlockSpec(memory_space=pltpu.MemorySpace.VMEM),
            ],
            out_specs=pl.BlockSpec((tile, 1), lambda i: (i, 0)),
        ),
        compiler_params=pltpu.CompilerParams(
            dimension_semantics=("parallel",)),
        cost_estimate=cost,
    )(x, w_blob, b_blob)

    return out[:B]


def reference_forward(x, params):
    """Pure-JAX f32 reference using the standard (stable) Mish."""
    h = x
    for (w, b) in params[:-1]:
        z = h @ w + b
        h = z * jnp.tanh(jnp.logaddexp(z, 0.0))
    w, b = params[-1]
    return h @ w + b


if __name__ == "__main__":
    key = jax.random.PRNGKey(0)
    pkey, xkey = jax.random.split(key)

    # non-zero biases so the post-matmul bias-add path is exercised;
    # the PyTorch init zeros biases, but forward semantics are identical.
    params = init_params(pkey, bias_init="random")
    w_blob, b_blob = pack_params(params)

    B = 256                          # small demo batch -> tile=128, grid=(2,)
    x = jax.random.normal(xkey, (B, IN_FEATURES), jnp.float32)

    out = features13_nn_forward(x, w_blob, b_blob)
    out = jax.block_until_ready(out)

    ref = reference_forward(x, params)
    assert out.shape == (B, 1)
    # Tolerance covers bf16 MXU operands (weights + activations rounded to
    # bf16, f32 accumulation) plus the approx EUP reciprocal in fast Mish.
    max_err = float(jnp.max(jnp.abs(out - ref)))
    assert jnp.allclose(out, ref, atol=5e-2, rtol=5e-2), (
        f"mismatch vs reference, max abs err={max_err}")

    print("KERNEL_OK")
</pallas_src>

<mosaic_0001>
module attributes {stable_mosaic.version = 11 : i64} {
  func.func @mlp_kernel(%arg0: i32, %arg1: memref<128x13xf32, #tpu.memory_space<vmem>>, %arg2: memref<272x128xbf16, #tpu.memory_space<vmem>>, %arg3: memref<8x128xf32, #tpu.memory_space<vmem>>, %arg4: memref<128x1xf32, #tpu.memory_space<vmem>>) attributes {dimension_semantics = [#tpu.dimension_semantics<parallel>], iteration_bounds = array<i64: 2>, scalar_prefetch = 0 : i64, scratch_operands = 0 : i64, tpu.core_type = #tpu.core_type<tc>, window_params = [{transform_indices = @transform_0, window_bounds = array<i64: 128, 13>}, {pipeline_mode = #tpu.pipeline_mode<synchronous>, transform_indices = @transform_1, window_bounds = array<i64: 272, 128>}, {pipeline_mode = #tpu.pipeline_mode<synchronous>, transform_indices = @transform_2, window_bounds = array<i64: 8, 128>}, {transform_indices = @transform_3, window_bounds = array<i64: 128, 1>}]} {
    %c0 = arith.constant 0 : index
    %c0_0 = arith.constant 0 : index
    %0 = vector.load %arg1[%c0, %c0_0] : memref<128x13xf32, #tpu.memory_space<vmem>>, vector<128x13xf32>
    %1 = arith.truncf %0 : vector<128x13xf32> to vector<128x13xbf16>
    %c0_1 = arith.constant 0 : index
    %c0_2 = arith.constant 0 : index
    %2 = vector.load %arg2[%c0_1, %c0_2] : memref<272x128xbf16, #tpu.memory_space<vmem>>, vector<13x128xbf16>
    %cst = arith.constant dense<0.000000e+00> : vector<128x128xf32>
    %3 = tpu.matmul %1, %2, %cst {dimension_numbers = #tpu.dot_dimension_numbers<[1], [0], [0], [1], [0, 0, 1, 1], [], []>} : vector<128x13xbf16>, vector<13x128xbf16>, vector<128x128xf32> -> vector<128x128xf32>
    %c0_3 = arith.constant 0 : index
    %c0_4 = arith.constant 0 : index
    %4 = vector.load %arg3[%c0_3, %c0_4] : memref<8x128xf32, #tpu.memory_space<vmem>>, vector<1x128xf32>
    %5 = vector.broadcast %4 : vector<1x128xf32> to vector<128x128xf32>
    %6 = arith.addf %3, %5 : vector<128x128xf32>
    %cst_5 = arith.constant 2.000000e+01 : f32
    %7 = vector.broadcast %cst_5 : f32 to vector<128x128xf32>
    %8 = arith.minimumf %6, %7 : vector<128x128xf32>
    %9 = math.exp %8 : vector<128x128xf32>
    %cst_6 = arith.constant 2.000000e+00 : f32
    %10 = vector.broadcast %cst_6 : f32 to vector<128x128xf32>
    %11 = arith.addf %9, %10 : vector<128x128xf32>
    %12 = arith.mulf %9, %11 : vector<128x128xf32>
    %13 = arith.mulf %6, %12 : vector<128x128xf32>
    %cst_7 = arith.constant 2.000000e+00 : f32
    %14 = vector.broadcast %cst_7 : f32 to vector<128x128xf32>
    %15 = arith.addf %12, %14 : vector<128x128xf32>
    %16 = tpu.reciprocal %15 {approx = true} : vector<128x128xf32> -> vector<128x128xf32>
    %17 = arith.mulf %13, %16 : vector<128x128xf32>
    %18 = vector.extract_strided_slice %17 {offsets = [0, 0], sizes = [128, 64], strides = [1, 1]} : vector<128x128xf32> to vector<128x64xf32>
    %19 = arith.truncf %18 : vector<128x64xf32> to vector<128x64xbf16>
    %c16 = arith.constant 16 : index
    %c0_8 = arith.constant 0 : index
    %20 = vector.load %arg2[%c16, %c0_8] : memref<272x128xbf16, #tpu.memory_space<vmem>>, vector<64x128xbf16>
    %cst_9 = arith.constant dense<0.000000e+00> : vector<128x128xf32>
    %21 = tpu.matmul %19, %20, %cst_9 {dimension_numbers = #tpu.dot_dimension_numbers<[1], [0], [0], [1], [0, 0, 1, 1], [], []>} : vector<128x64xbf16>, vector<64x128xbf16>, vector<128x128xf32> -> vector<128x128xf32>
    %c1 = arith.constant 1 : index
    %c0_10 = arith.constant 0 : index
    %22 = vector.load %arg3[%c1, %c0_10] : memref<8x128xf32, #tpu.memory_space<vmem>>, vector<1x128xf32>
    %23 = vector.broadcast %22 : vector<1x128xf32> to vector<128x128xf32>
    %24 = arith.addf %21, %23 : vector<128x128xf32>
    %cst_11 = arith.constant 2.000000e+01 : f32
    %25 = vector.broadcast %cst_11 : f32 to vector<128x128xf32>
    %26 = arith.minimumf %24, %25 : vector<128x128xf32>
    %27 = math.exp %26 : vector<128x128xf32>
    %cst_12 = arith.constant 2.000000e+00 : f32
    %28 = vector.broadcast %cst_12 : f32 to vector<128x128xf32>
    %29 = arith.addf %27, %28 : vector<128x128xf32>
    %30 = arith.mulf %27, %29 : vector<128x128xf32>
    %31 = arith.mulf %24, %30 : vector<128x128xf32>
    %cst_13 = arith.constant 2.000000e+00 : f32
    %32 = vector.broadcast %cst_13 : f32 to vector<128x128xf32>
    %33 = arith.addf %30, %32 : vector<128x128xf32>
    %34 = tpu.reciprocal %33 {approx = true} : vector<128x128xf32> -> vector<128x128xf32>
    %35 = arith.mulf %31, %34 : vector<128x128xf32>
    %36 = vector.extract_strided_slice %35 {offsets = [0, 0], sizes = [128, 64], strides = [1, 1]} : vector<128x128xf32> to vector<128x64xf32>
    %37 = arith.truncf %36 : vector<128x64xf32> to vector<128x64xbf16>
    %c80 = arith.constant 80 : index
    %c0_14 = arith.constant 0 : index
    %38 = vector.load %arg2[%c80, %c0_14] : memref<272x128xbf16, #tpu.memory_space<vmem>>, vector<64x128xbf16>
    %cst_15 = arith.constant dense<0.000000e+00> : vector<128x128xf32>
    %39 = tpu.matmul %37, %38, %cst_15 {dimension_numbers = #tpu.dot_dimension_numbers<[1], [0], [0], [1], [0, 0, 1, 1], [], []>} : vector<128x64xbf16>, vector<64x128xbf16>, vector<128x128xf32> -> vector<128x128xf32>
    %c2 = arith.constant 2 : index
    %c0_16 = arith.constant 0 : index
    %40 = vector.load %arg3[%c2, %c0_16] : memref<8x128xf32, #tpu.memory_space<vmem>>, vector<1x128xf32>
    %41 = vector.broadcast %40 : vector<1x128xf32> to vector<128x128xf32>
    %42 = arith.addf %39, %41 : vector<128x128xf32>
    %cst_17 = arith.constant 2.000000e+01 : f32
    %43 = vector.broadcast %cst_17 : f32 to vector<128x128xf32>
    %44 = arith.minimumf %42, %43 : vector<128x128xf32>
    %45 = math.exp %44 : vector<128x128xf32>
    %cst_18 = arith.constant 2.000000e+00 : f32
    %46 = vector.broadcast %cst_18 : f32 to vector<128x128xf32>
    %47 = arith.addf %45, %46 : vector<128x128xf32>
    %48 = arith.mulf %45, %47 : vector<128x128xf32>
    %49 = arith.mulf %42, %48 : vector<128x128xf32>
    %cst_19 = arith.constant 2.000000e+00 : f32
    %50 = vector.broadcast %cst_19 : f32 to vector<128x128xf32>
    %51 = arith.addf %48, %50 : vector<128x128xf32>
    %52 = tpu.reciprocal %51 {approx = true} : vector<128x128xf32> -> vector<128x128xf32>
    %53 = arith.mulf %49, %52 : vector<128x128xf32>
    %54 = vector.extract_strided_slice %53 {offsets = [0, 0], sizes = [128, 64], strides = [1, 1]} : vector<128x128xf32> to vector<128x64xf32>
    %55 = arith.truncf %54 : vector<128x64xf32> to vector<128x64xbf16>
    %c144 = arith.constant 144 : index
    %c0_20 = arith.constant 0 : index
    %56 = vector.load %arg2[%c144, %c0_20] : memref<272x128xbf16, #tpu.memory_space<vmem>>, vector<64x128xbf16>
    %cst_21 = arith.constant dense<0.000000e+00> : vector<128x128xf32>
    %57 = tpu.matmul %55, %56, %cst_21 {dimension_numbers = #tpu.dot_dimension_numbers<[1], [0], [0], [1], [0, 0, 1, 1], [], []>} : vector<128x64xbf16>, vector<64x128xbf16>, vector<128x128xf32> -> vector<128x128xf32>
    %c3 = arith.constant 3 : index
    %c0_22 = arith.constant 0 : index
    %58 = vector.load %arg3[%c3, %c0_22] : memref<8x128xf32, #tpu.memory_space<vmem>>, vector<1x128xf32>
    %59 = vector.broadcast %58 : vector<1x128xf32> to vector<128x128xf32>
    %60 = arith.addf %57, %59 : vector<128x128xf32>
    %cst_23 = arith.constant 2.000000e+01 : f32
    %61 = vector.broadcast %cst_23 : f32 to vector<128x128xf32>
    %62 = arith.minimumf %60, %61 : vector<128x128xf32>
    %63 = math.exp %62 : vector<128x128xf32>
    %cst_24 = arith.constant 2.000000e+00 : f32
    %64 = vector.broadcast %cst_24 : f32 to vector<128x128xf32>
    %65 = arith.addf %63, %64 : vector<128x128xf32>
    %66 = arith.mulf %63, %65 : vector<128x128xf32>
    %67 = arith.mulf %60, %66 : vector<128x128xf32>
    %cst_25 = arith.constant 2.000000e+00 : f32
    %68 = vector.broadcast %cst_25 : f32 to vector<128x128xf32>
    %69 = arith.addf %66, %68 : vector<128x128xf32>
    %70 = tpu.reciprocal %69 {approx = true} : vector<128x128xf32> -> vector<128x128xf32>
    %71 = arith.mulf %67, %70 : vector<128x128xf32>
    %72 = vector.extract_strided_slice %71 {offsets = [0, 0], sizes = [128, 64], strides = [1, 1]} : vector<128x128xf32> to vector<128x64xf32>
    %73 = arith.truncf %72 : vector<128x64xf32> to vector<128x64xbf16>
    %c208 = arith.constant 208 : index
    %c0_26 = arith.constant 0 : index
    %74 = vector.load %arg2[%c208, %c0_26] : memref<272x128xbf16, #tpu.memory_space<vmem>>, vector<64x128xbf16>
    %cst_27 = arith.constant dense<0.000000e+00> : vector<128x128xf32>
    %75 = tpu.matmul %73, %74, %cst_27 {dimension_numbers = #tpu.dot_dimension_numbers<[1], [0], [0], [1], [0, 0, 1, 1], [], []>} : vector<128x64xbf16>, vector<64x128xbf16>, vector<128x128xf32> -> vector<128x128xf32>
    %c4 = arith.constant 4 : index
    %c0_28 = arith.constant 0 : index
    %76 = vector.load %arg3[%c4, %c0_28] : memref<8x128xf32, #tpu.memory_space<vmem>>, vector<1x128xf32>
    %77 = vector.broadcast %76 : vector<1x128xf32> to vector<128x128xf32>
    %78 = arith.addf %75, %77 : vector<128x128xf32>
    %79 = vector.extract_strided_slice %78 {offsets = [0, 0], sizes = [128, 1], strides = [1, 1]} : vector<128x128xf32> to vector<128x1xf32>
    %c0_29 = arith.constant 0 : index
    %c0_30 = arith.constant 0 : index
    %80 = vector.load %arg4[%c0_29, %c0_30] : memref<128x1xf32, #tpu.memory_space<vmem>>, vector<128x1xf32>
    tpu.vector_store %arg4[%c0_29, %c0_30], %79 {strides = array<i32>} : memref<128x1xf32, #tpu.memory_space<vmem>>, vector<128x1xf32>,
    return
  }
  func.func @transform_0(%arg0: i32) -> (i32, i32) {
    %c0_i32 = arith.constant 0 : i32
    %c0_i32_0 = arith.constant 0 : i32
    return %arg0, %c0_i32 : i32, i32
  }
  func.func @transform_1(%arg0: i32) -> (i32, i32) {
    %c0_i32 = arith.constant 0 : i32
    %c0_i32_0 = arith.constant 0 : i32
    %c0_i32_1 = arith.constant 0 : i32
    return %c0_i32, %c0_i32_0 : i32, i32
  }
  func.func @transform_2(%arg0: i32) -> (i32, i32) {
    %c0_i32 = arith.constant 0 : i32
    %c0_i32_0 = arith.constant 0 : i32
    %c0_i32_1 = arith.constant 0 : i32
    return %c0_i32, %c0_i32_0 : i32, i32
  }
  func.func @transform_3(%arg0: i32) -> (i32, i32) {
    %c0_i32 = arith.constant 0 : i32
    %c0_i32_0 = arith.constant 0 : i32
    return %arg0, %c0_i32 : i32, i32
  }
}

</mosaic_0001>

<bundles_post_ra>
// kernel: features13_nn_forward.1
= control target key start
LH: loop header
LB: loop body
LE: loop exit
PB: predicated region body
PF: predicated region fallthrough
CT: control target
= control target key end

     0   :  { %s2211_s12 = smov 0   ;;  %s2831_s0 = inlined_call_operand.vmem [shape: f32[256,13], index: 0, kind: input, shape index: {}]   ;;  %s2832_s1 = inlined_call_operand.vmem [shape: bf16[272,128], index: 1, kind: input, shape index: {}]   ;;  %s2833_s2 = inlined_call_operand.vmem [shape: f32[8,128], index: 2, kind: input, shape index: {}]   ;;  %s2834_s3 = inlined_call_operand.vmem [shape: f32[256,1], index: 3, kind: output, shape index: {}]  }
   0x1 LB: > { %s1654_s13 = sadd.s32 4294967295, %s2188_s12   ;;  %p1658_p0 = scmp.ge.s32.totalorder %s2188_s12, 1  ;;  %s2188_s12 = sphi %s2211_s12, %s13_s12  }
   0x2   : > { %p138_p1 = scmp.lt.s32.totalorder %s2188_s12, 3 }
   0x4   : > { %p139_p2 = pnand %p1658_p0, %p138_p1 }
   0x5   : > { %s1659_s16 = sshll.u32 (!%p139_p2), %s1654_s13, 4 }
   0x6   : > { %142 = sbr.rel (%p139_p2) target bundleno = 1231 (0x4cf), region = 32  ;;  %p163_p3 = scmp.lt.s32.totalorder (!%p139_p2), %s1659_s16, 31 }
   0xb   : > { %v1909_v0 = vld [vmem:[%s2832_s1] sm:$0x7f]   ;;  %vm236_vm0 = vcmask 1045504   ;;  %vm237_vm1 = vcmask 1046528   ;;  %v2190_v1 = vmov 65535   ;;  %s2836_s16 = smov (!%p163_p3, %s1659_s16), 31 }
   0xc   : > { %v238_v2 = vsel %vm236_vm0, 4294967295, %v2190_v1  ;;  %s1660_s17 = sshll.u32 %s2836_s16, 3  ;;  %vm211_vm2 = vcmask 105472   ;;  %v1910_v29 = vld [vmem:[%s2832_s1 + $0x20] sm:$0xff]   ;;  %v1911_v30 = vld [vmem:[%s2832_s1 + $0x18] sm:$0xff]   ;;  %v1912_v31 = vld [vmem:[%s2832_s1 + $0x10] sm:$0xff]  }
   0xd   : > { %v239_v3 = vsel %vm237_vm1, %v238_v2, 0  ;;  %s166_s20 = scalar_lea.vmem %s2831_s0, %s1660_s17  ;;  %v1913_v32 = vld [vmem:[%s2832_s1 + $0x8] sm:$0xff]   ;;  %v2253_v33 = vld [vmem:[%s2833_s2] ss:$0 sm:$0xff]  ;;  %vm529_vm3 = vcmask 523264   ;;  %s2794_s15 = scalar_lea.vmem %s2834_s3, %s1660_s17  ;;  %vm1581_vm4 = vcmask 7168  }
   0xe   : > { %v241_v4 = vand.u32 %v1909_v0, %v239_v3  ;;  %v175_v5 = vld [vmem:[%s166_s20] sm:$0xff]  ;;  %v176_v6 = vld [vmem:[%s166_s20 + $0x8] sm:$0xff]  ;;  %v177_v10 = vld [vmem:[%s166_s20 + $0x10] sm:$0xff] }
   0xf   : > { %v183_v7 = vld [vmem:[%s166_s20 + $0x40] sm:$0xff]  ;;  %v191_v8 = vpack.c.bf16 %v176_v6, %v175_v5  ;;  %v184_v9 = vld [vmem:[%s166_s20 + $0x48] sm:$0xff]  ;;  %v178_v11 = vld [vmem:[%s166_s20 + $0x18] sm:$0xff] }
  0x10   : > { %1784 = vmatprep.subr.bf16.mxu0 %v241_v4  ;;  %1898 = vmatprep.subr.bf16.mxu1 %v241_v4  ;;  %v195_v12 = vpack.c.bf16 %v184_v9, %v183_v7  ;;  %v192_v13 = vpack.c.bf16 %v178_v11, %v177_v10  ;;  %v185_v14 = vld [vmem:[%s166_s20 + $0x50] sm:$0xff]  ;;  %v186_v15 = vld [vmem:[%s166_s20 + $0x58] sm:$0xff]  ;;  %v179_v16 = vld [vmem:[%s166_s20 + $0x20] sm:$0xff] }
  0x11   : > { %1785 = vmatpush3.bf16.msra.mxu0 %v241_v4  ;;  %1899 = vmatpush3.bf16.msra.mxu1 %v241_v4  ;;  %v196_v17 = vpack.c.bf16 %v186_v15, %v185_v14  ;;  %v180_v18 = vld [vmem:[%s166_s20 + $0x28] sm:$0xff]  ;;  %v187_v19 = vld [vmem:[%s166_s20 + $0x60] sm:$0xff]  ;;  %v181_v23 = vld [vmem:[%s166_s20 + $0x30] sm:$0xff] }
  0x12   : > { %1786 = vmatprep.mubr.msk.bf16.mxu0 %vm211_vm2, %v191_v8  ;;  %v188_v20 = vld [vmem:[%s166_s20 + $0x68] sm:$0xff]  ;;  %1794 = vmatprep.mubr.msk.bf16.mxu1 %vm211_vm2, %v195_v12  ;;  %v193_v21 = vpack.c.bf16 %v180_v18, %v179_v16  ;;  %v182_v24 = vld [vmem:[%s166_s20 + $0x38] sm:$0xff]  ;;  %v189_v25 = vld [vmem:[%s166_s20 + $0x70] sm:$0xff] }
  0x13   : > { %v197_v22 = vpack.c.bf16 %v188_v20, %v187_v19  ;;  %v190_v26 = vld [vmem:[%s166_s20 + $0x78] sm:$0xff]  ;;  %v194_v27 = vpack.c.bf16 %v182_v24, %v181_v23  ;;  %1802 = vmatprep.subr.bf16.mxu1 %v1910_v29 }
  0x14   : > { %1787 = vmatmul.mubr.msk.bf16.vlgmr.msra.gmra.mxu0 %vm211_vm2, %v192_v13  ;;  %1795 = vmatmul.mubr.msk.bf16.vlgmr.msra.gmra.mxu1 %vm211_vm2, %v196_v17  ;;  %v198_v28 = vpack.c.bf16 %v190_v26, %v189_v25 }
  0x15   : > { %1790 = vmatprep.mubr.msk.bf16.mxu0 %vm211_vm2, %v193_v21  ;;  %1798 = vmatprep.mubr.msk.bf16.mxu1 %vm211_vm2, %v197_v22 }
  0x16   : > { %1803 = vmatpush3.bf16.msra.mxu1 %v1910_v29 }
  0x17   : > { %1804 = vmatprep.subr.bf16.mxu1 %v1911_v30 }
  0x1a   : > { %1805 = vmatpush3.bf16.msra.mxu1 %v1911_v30 }
  0x1b   : > { %1806 = vmatprep.subr.bf16.mxu1 %v1912_v31 }
  0x1c   : > { %1791 = vmatmul.mubr.msk.bf16.gmra.mxu0 %vm211_vm2, %v194_v27  ;;  %1799 = vmatmul.mubr.msk.bf16.gmra.mxu1 %vm211_vm2, %v198_v28 }
  0x1e   : > { %1807 = vmatpush3.bf16.msra.mxu1 %v1912_v31 }
  0x1f   : > { %1808 = vmatprep.subr.bf16.mxu1 %v1913_v32 }
  0x22   : > { %1809 = vmatpush3.bf16.msra.mxu1 %v1913_v32 }
  0xd4   : > { %v1788_v34 = vpop.f32.mrf.mxu0  ;;  %v1796_v36 = vpop.f32.mrf.mxu1 }
  0xd5   : > { %v2256_v35 = vadd.f32 %v1788_v34, %v2253_v33  ;;  %v2285_v61 = vadd.f32 %v1796_v36, %v2253_v33 }
  0xd6   : > { %v277_v37 = vpop.f32.mrf.mxu0  ;;  %v309_v40 = vpop.f32.mrf.mxu1 }
  0xd7   : > { %v342_v38 = vmin.f32 %v2256_v35, 20.0  ;;  %v2260_v39 = vadd.f32 %v2253_v33, %v277_v37  ;;  %v2263_v41 = vadd.f32 %v2253_v33, %v309_v40  ;;  %v350_v17 = vmin.f32 %v2285_v61, 20.0 }
  0xd8   : > { %v1789_v42 = vpop.f32.mrf.mxu0  ;;  %v1797_v46 = vpop.f32.mrf.mxu1 }
  0xd9   : > { %v360_v43 = vmul.f32 1.442695, %v342_v38  ;;  %v340_v44 = vmin.f32 %v2260_v39, 20.0  ;;  %v2267_v45 = vadd.f32 %v1789_v42, %v2253_v33  ;;  %v348_v47 = vmin.f32 %v2263_v41, 20.0 }
  0xda   : > { %v280_v48 = vpop.f32.mrf.mxu0  ;;  %v312_v52 = vpop.f32.mrf.mxu1  ;;  %v2275_v54 = vadd.f32 %v1797_v46, %v2253_v33  ;;  %v376_v28 = vmul.f32 1.442695, %v350_v17 }
  0xdb   : > { %1926 = vpow2.f32 %v360_v43  ;;  %v356_v49 = vmul.f32 1.442695, %v340_v44  ;;  %v343_v50 = vmin.f32 %v2267_v45, 20.0  ;;  %v2272_v51 = vadd.f32 %v2253_v33, %v280_v48 }
  0xdc   : > { %v372_v53 = vmul.f32 1.442695, %v348_v47  ;;  %v2278_v55 = vadd.f32 %v2253_v33, %v312_v52  ;;  %v1792_v56 = vpop.f32.mrf.mxu0  ;;  %v1800_v60 = vpop.f32.mrf.mxu1  ;;  %v351_v4 = vmin.f32 %v2275_v54, 20.0 }
  0xdd   : > { %1928 = vpow2.f32 %v356_v49  ;;  %v362_v57 = vmul.f32 1.442695, %v343_v50  ;;  %v341_v58 = vmin.f32 %v2272_v51, 20.0  ;;  %v2282_v59 = vadd.f32 %v1792_v56, %v2253_v33 }
  0xde   : > { %v349_v62 = vmin.f32 %v2278_v55, 20.0  ;;  %v293_v63 = vpop.f32.mrf.mxu0  ;;  %v325_v3 = vpop.f32.mrf.mxu1  ;;  %v378_v18 = vmul.f32 1.442695, %v351_v4  ;;  %v2315_v25 = vadd.f32 %v1800_v60, %v2253_v33 }
  0xdf   : > { %1930 = vpow2.f32 %v362_v57  ;;  %v358_v0 = vmul.f32 1.442695, %v341_v58  ;;  %v346_v1 = vmin.f32 %v2282_v59, 20.0  ;;  %v2290_v2 = vadd.f32 %v2253_v33, %v293_v63 }
  0xe0   : > { %1932 = vpow2.f32 %v372_v53  ;;  %v374_v5 = vmul.f32 1.442695, %v349_v62  ;;  %v2294_v6 = vadd.f32 %v2253_v33, %v325_v3  ;;  %v1793_v7 = vpop.f32.mrf.mxu0  ;;  %v1801_v11 = vpop.f32.mrf.mxu1  ;;  %v354_v37 = vmin.f32 %v2315_v25, 20.0 }
  0xe1   : > { %1934 = vpow2.f32 %v358_v0  ;;  %v368_v8 = vmul.f32 1.442695, %v346_v1  ;;  %v344_v9 = vmin.f32 %v2290_v2, 20.0  ;;  %v2298_v10 = vadd.f32 %v1793_v7, %v2253_v33 }
  0xe2   : > { %1936 = vpow2.f32 %v374_v5  ;;  %v296_v12 = vpop.f32.mrf.mxu0  ;;  %v328_v16 = vpop.f32.mrf.mxu1  ;;  %v352_v20 = vmin.f32 %v2294_v6, 20.0  ;;  %v2311_v23 = vadd.f32 %v1801_v11, %v2253_v33  ;;  %v384_v49 = vmul.f32 1.442695, %v354_v37 }
  0xe3   : > { %v364_v13 = vmul.f32 1.442695, %v344_v9  ;;  %v347_v14 = vmin.f32 %v2298_v10, 20.0  ;;  %v2302_v15 = vadd.f32 %v2253_v33, %v296_v12  ;;  %1938 = vpow2.f32 %v368_v8 }
  0xe4   : > { %v2306_v19 = vadd.f32 %v2253_v33, %v328_v16  ;;  %v380_v30 = vmul.f32 1.442695, %v352_v20  ;;  %v355_v34 = vmin.f32 %v2311_v23, 20.0 }
  0xe5   : > { %1940 = vpow2.f32 %v364_v13  ;;  %v370_v21 = vmul.f32 1.442695, %v347_v14  ;;  %v345_v22 = vmin.f32 %v2302_v15, 20.0 }
  0xe6   : > { %v353_v24 = vmin.f32 %v2306_v19, 20.0  ;;  %1942 = vpow2.f32 %v378_v18  ;;  %v386_v46 = vmul.f32 1.442695, %v355_v34 }
  0xe7   : > { %v366_v26 = vmul.f32 1.442695, %v345_v22  ;;  %1944 = vpow2.f32 %v370_v21 }
  0xe8   : > { %v1927_v27 = vpop.eup %1926  ;;  %v382_v29 = vmul.f32 1.442695, %v353_v24 }
  0xe9   : > { %v390_v32 = vadd.f32 2.0, %v1927_v27  ;;  %1946 = vpow2.f32 %v366_v26 }
  0xea   : > { %v1929_v31 = vpop.eup %1928  ;;  %1948 = vpow2.f32 %v382_v29 }
  0xeb   : > { %v388_v36 = vadd.f32 2.0, %v1929_v31  ;;  %1950 = vpow2.f32 %v376_v28  ;;  %v2321_v44 = vmul.f32 %v1927_v27, %v390_v32 }
  0xec   : > { %v1931_v38 = vpop.eup %1930  ;;  %1952 = vpow2.f32 %v380_v30 }
  0xed   : > { %v1933_v33 = vpop.eup %1932  ;;  %v2319_v40 = vmul.f32 %v1929_v31, %v388_v36  ;;  %v391_v42 = vadd.f32 2.0, %v1931_v38  ;;  %v438_v60 = vadd.f32 2.0, %v2321_v44  ;;  %1954 = vpow2.f32 %v386_v46 }
  0xee   : > { %v1935_v43 = vpop.eup %1934  ;;  %v396_v50 = vadd.f32 2.0, %v1933_v33  ;;  %1956 = vpow2.f32 %v384_v49 }
  0xef   : > { %v1937_v47 = vpop.eup %1936  ;;  %v407_v48 = vmul.f32 %v1931_v38, %v391_v42  ;;  %v436_v53 = vadd.f32 2.0, %v2319_v40  ;;  %v389_v57 = vadd.f32 2.0, %v1935_v43 }
  0xf0   : > { %v1939_v52 = vpop.eup %1938  ;;  %v397_v62 = vadd.f32 2.0, %v1937_v47  ;;  %v2325_v0 = vmul.f32 %v1933_v33, %v396_v50 }
  0xf1   : > { %v439_v56 = vadd.f32 2.0, %v407_v48  ;;  %v405_v63 = vmul.f32 %v1935_v43, %v389_v57  ;;  %v394_v1 = vadd.f32 2.0, %v1939_v52  ;;  %v423_v49 = vmul.f32 %v407_v48, %v2267_v45 }
  0xf2   : > { %v1941_v58 = vpop.eup %1940  ;;  %v2327_v7 = vmul.f32 %v1937_v47, %v397_v62  ;;  %v444_v13 = vadd.f32 2.0, %v2325_v0  ;;  %v422_v62 = vmul.f32 %v2321_v44, %v2256_v35 }
  0xf3   : > { %1958 = vrcp.f32 %v439_v56  ;;  %v392_v3 = vadd.f32 2.0, %v1941_v58  ;;  %v1943_v4 = vpop.eup %1942  ;;  %v437_v5 = vadd.f32 2.0, %v405_v63  ;;  %v2332_v14 = vmul.f32 %v1939_v52, %v394_v1 }
  0xf4   : > { %1960 = vrcp.f32 %v436_v53  ;;  %v1945_v8 = vpop.eup %1944  ;;  %v445_v17 = vadd.f32 2.0, %v2327_v7  ;;  %v399_v21 = vadd.f32 2.0, %v1943_v4  ;;  %v420_v56 = vmul.f32 %v2319_v40, %v2260_v39 }
  0xf5   : > { %1962 = vrcp.f32 %v438_v60  ;;  %v2329_v9 = vmul.f32 %v1941_v58, %v392_v3  ;;  %v395_v18 = vadd.f32 2.0, %v1945_v8  ;;  %v442_v29 = vadd.f32 2.0, %v2332_v14 }
  0xf6   : > { %v1947_v11 = vpop.eup %1946  ;;  %1964 = vrcp.f32 %v437_v5  ;;  %v2337_v34 = vmul.f32 %v1943_v4, %v399_v21  ;;  %v421_v57 = vmul.f32 %v405_v63, %v2272_v51 }
  0xf7   : > { %v1949_v12 = vpop.eup %1948  ;;  %v440_v22 = vadd.f32 2.0, %v2329_v9  ;;  %v393_v24 = vadd.f32 2.0, %v1947_v11  ;;  %v411_v26 = vmul.f32 %v1945_v8, %v395_v18  ;;  %1966 = vrcp.f32 %v444_v13 }
  0xf8   : > { %v1951_v16 = vpop.eup %1950  ;;  %v401_v27 = vadd.f32 2.0, %v1949_v12  ;;  %1968 = vrcp.f32 %v445_v17  ;;  %v447_v50 = vadd.f32 2.0, %v2337_v34  ;;  %v424_v21 = vmul.f32 %v2329_v9, %v2290_v2 }
  0xf9   : > { %v1953_v20 = vpop.eup %1952  ;;  %v398_v28 = vadd.f32 2.0, %v1951_v16  ;;  %v409_v30 = vmul.f32 %v1947_v11, %v393_v24  ;;  %v443_v32 = vadd.f32 2.0, %v411_v26  ;;  %1970 = vrcp.f32 %v440_v22 }
  0xfa   : > { %v400_v31 = vadd.f32 2.0, %v1953_v20  ;;  %v1955_v36 = vpop.eup %1954  ;;  %v2339_v38 = vmul.f32 %v1949_v12, %v401_v27  ;;  %v427_v17 = vmul.f32 %v411_v26, %v2298_v10  ;;  %v426_v27 = vmul.f32 %v2332_v14, %v2282_v59 }
  0xfb   : > { %1972 = vrcp.f32 %v443_v32  ;;  %v441_v37 = vadd.f32 2.0, %v409_v30  ;;  %v1957_v33 = vpop.eup %1956  ;;  %v2341_v42 = vmul.f32 %v1951_v16, %v398_v28  ;;  %v403_v52 = vadd.f32 2.0, %v1955_v36 }
  0xfc   : > { %1974 = vrcp.f32 %v442_v29  ;;  %v2343_v46 = vmul.f32 %v1953_v20, %v400_v31  ;;  %v449_v58 = vadd.f32 2.0, %v2339_v38  ;;  %v402_v4 = vadd.f32 2.0, %v1957_v33 }
  0xfd   : > { %1976 = vrcp.f32 %v441_v37  ;;  %v446_v1 = vadd.f32 2.0, %v2341_v42  ;;  %v419_v11 = vmul.f32 %v1955_v36, %v403_v52  ;;  %v429_v20 = vmul.f32 %v2327_v7, %v2278_v55 }
  0xfe   : > { %v448_v5 = vadd.f32 2.0, %v2343_v46  ;;  %1978 = vrcp.f32 %v447_v50  ;;  %v418_v40 = vmul.f32 %v1957_v33, %v402_v4  ;;  %v425_v22 = vmul.f32 %v409_v30, %v2302_v15 }
  0xff   : > { %1980 = vrcp.f32 %v449_v58  ;;  %v451_v44 = vadd.f32 2.0, %v419_v11  ;;  %v428_v29 = vmul.f32 %v2325_v0, %v2263_v41  ;;  %v431_v59 = vmul.f32 %v2337_v34, %v2275_v54 }
 0x100   : > { %v1959_v43 = vpop.eup %1958  ;;  %1982 = vrcp.f32 %v446_v1  ;;  %v450_v16 = vadd.f32 2.0, %v418_v40  ;;  %v433_v41 = vmul.f32 %v2339_v38, %v2306_v19  ;;  %v430_v30 = vmul.f32 %v2341_v42, %v2285_v61 }
 0x101   : > { %v1961_v47 = vpop.eup %1960  ;;  %v471_v3 = vmul.f32 %v1959_v43, %v423_v49  ;;  %1984 = vrcp.f32 %v448_v5  ;;  %v432_v33 = vmul.f32 %v2343_v46, %v2294_v6  ;;  %v435_v52 = vmul.f32 %v419_v11, %v2311_v23  ;;  %v1914_v6 = vld [vmem:[%s2832_s1 + $0x40] sm:$0xff]   ;;  %v1915_v23 = vld [vmem:[%s2832_s1 + $0x38] sm:$0xff]   ;;  %v1917_v46 = vld [vmem:[%s2832_s1 + $0x28] sm:$0xff]  }
 0x102   : > { %v1963_v53 = vpop.eup %1962  ;;  %v468_v45 = vmul.f32 %v1961_v47, %v420_v56  ;;  %1986 = vrcp.f32 %v451_v44  ;;  %v434_v38 = vmul.f32 %v418_v40, %v2315_v25  ;;  %1826 = vmatprep.subr.bf16.mxu0 %v1914_v6  ;;  %v1916_v25 = vld [vmem:[%s2832_s1 + $0x30] sm:$0xff]   ;;  %v2398_v56 = vld [vmem:[%s2833_s2 + $0x1] ss:$0 sm:$0xff] }
 0x103   : > { %v1965_v60 = vpop.eup %1964  ;;  %v470_v8 = vmul.f32 %v1963_v53, %v422_v62  ;;  %1988 = vrcp.f32 %v450_v16  ;;  %1827 = vmatpush3.bf16.msra.mxu0 %v1914_v6 }
 0x104   : > { %v469_v48 = vmul.f32 %v1965_v60, %v421_v57  ;;  %v1967_v63 = vpop.eup %1966  ;;  %1828 = vmatprep.subr.bf16.mxu0 %v1915_v23 }
 0x105   : > { %v485_v51 = vpack.c.bf16 %v471_v3, %v470_v8  ;;  %v1969_v35 = vpop.eup %1968  ;;  %v476_v55 = vmul.f32 %v1967_v63, %v428_v29 }
 0x106   : > { %v484_v39 = vpack.c.bf16 %v469_v48, %v468_v45  ;;  %v1971_v12 = vpop.eup %1970  ;;  %v477_v31 = vmul.f32 %v1969_v35, %v429_v20 }
 0x107   : > { %v472_v10 = vmul.f32 %v1971_v12, %v424_v21  ;;  %1829 = vmatpush3.bf16.msra.mxu0 %v1915_v23 }
 0x108   : > { %1810 = vmatprep.mubr.msk.bf16.mxu1 %vm529_vm3, %v484_v39  ;;  %v1973_v13 = vpop.eup %1972  ;;  %v488_v9 = vpack.c.bf16 %v477_v31, %v476_v55  ;;  %1830 = vmatprep.subr.bf16.mxu0 %v1916_v25 }
 0x109   : > { %1811 = vmatmul.mubr.msk.bf16.vlgmr.msra.gmra.mxu1 %vm529_vm3, %v485_v51  ;;  %v1975_v18 = vpop.eup %1974  ;;  %v475_v28 = vmul.f32 %v1973_v13, %v427_v17 }
 0x10a   : > { %v1977_v24 = vpop.eup %1976  ;;  %v474_v32 = vmul.f32 %v1975_v18, %v426_v27 }
 0x10b   : > { %v473_v26 = vmul.f32 %v1977_v24, %v425_v22  ;;  %v1979_v2 = vpop.eup %1978  ;;  %1831 = vmatpush3.bf16.msra.mxu0 %v1916_v25 }
 0x10c   : > { %v487_v36 = vpack.c.bf16 %v475_v28, %v474_v32  ;;  %v1981_v15 = vpop.eup %1980  ;;  %v479_v37 = vmul.f32 %v1979_v2, %v431_v59  ;;  %1832 = vmatprep.subr.bf16.mxu0 %v1917_v46 }
 0x10d   : > { %v486_v7 = vpack.c.bf16 %v473_v26, %v472_v10  ;;  %v1983_v14 = vpop.eup %1982  ;;  %v481_v43 = vmul.f32 %v1981_v15, %v433_v41 }
 0x10e   : > { %v1985_v0 = vpop.eup %1984  ;;  %v478_v47 = vmul.f32 %v1983_v14, %v430_v30 }
 0x10f   : > { %1814 = vmatprep.mubr.msk.bf16.mxu1 %vm529_vm3, %v486_v7  ;;  %v480_v49 = vmul.f32 %v1985_v0, %v432_v33  ;;  %v1987_v34 = vpop.eup %1986  ;;  %1833 = vmatpush3.bf16.msra.mxu0 %v1917_v46 }
 0x110   : > { %v489_v54 = vpack.c.bf16 %v479_v37, %v478_v47  ;;  %v1989_v19 = vpop.eup %1988  ;;  %v483_v61 = vmul.f32 %v1987_v34, %v435_v52 }
 0x111   : > { %1815 = vmatmul.mubr.msk.bf16.gmra.mxu1 %vm529_vm3, %v487_v36  ;;  %v490_v50 = vpack.c.bf16 %v481_v43, %v480_v49  ;;  %v482_v42 = vmul.f32 %v1989_v19, %v434_v38 }
 0x112   : > { %1818 = vmatprep.mubr.msk.bf16.mxu1 %vm529_vm3, %v488_v9 }
 0x113   : > { %v491_v53 = vpack.c.bf16 %v483_v61, %v482_v42 }
 0x119   : > { %1819 = vmatmul.mubr.msk.bf16.gmra.mxu1 %vm529_vm3, %v489_v54 }
 0x11a   : > { %1822 = vmatprep.mubr.msk.bf16.mxu1 %vm529_vm3, %v490_v50 }
 0x121   : > { %1823 = vmatmul.mubr.msk.bf16.gmra.mxu1 %vm529_vm3, %v491_v53 }
 0x1c9   : > { %v1812_v57 = vpop.f32.mrf.mxu1 }
 0x1ca   : > { %v2401_v58 = vadd.f32 %v1812_v57, %v2398_v56 }
 0x1cb   : > { %v588_v60 = vpop.f32.mrf.mxu1 }
 0x1cc   : > { %v653_v62 = vmin.f32 %v2401_v58, 20.0  ;;  %v2405_v1 = vadd.f32 %v2398_v56, %v588_v60 }
 0x1cd   : > { %v1813_v3 = vpop.f32.mrf.mxu1 }
 0x1ce   : > { %v671_v4 = vmul.f32 1.442695, %v653_v62  ;;  %v651_v45 = vmin.f32 %v2405_v1, 20.0  ;;  %v2409_v48 = vadd.f32 %v1813_v3, %v2398_v56 }
 0x1cf   : > { %v591_v5 = vpop.f32.mrf.mxu1 }
 0x1d0   : > { %1990 = vpow2.f32 %v671_v4  ;;  %v667_v8 = vmul.f32 1.442695, %v651_v45  ;;  %v654_v11 = vmin.f32 %v2409_v48, 20.0  ;;  %v2413_v39 = vadd.f32 %v2398_v56, %v591_v5 }
 0x1d1   : > { %v1816_v63 = vpop.f32.mrf.mxu1 }
 0x1d2   : > { %1992 = vpow2.f32 %v667_v8  ;;  %v673_v51 = vmul.f32 1.442695, %v654_v11  ;;  %v652_v40 = vmin.f32 %v2413_v39, 20.0  ;;  %v2417_v44 = vadd.f32 %v1816_v63, %v2398_v56 }
 0x1d3   : > { %v604_v12 = vpop.f32.mrf.mxu1 }
 0x1d4   : > { %1994 = vpow2.f32 %v673_v51  ;;  %v669_v35 = vmul.f32 1.442695, %v652_v40  ;;  %v657_v13 = vmin.f32 %v2417_v44, 20.0  ;;  %v2421_v16 = vadd.f32 %v2398_v56, %v604_v12 }
 0x1d5   : > { %v1817_v17 = vpop.f32.mrf.mxu1 }
 0x1d6   : > { %1996 = vpow2.f32 %v669_v35  ;;  %v679_v18 = vmul.f32 1.442695, %v657_v13  ;;  %v655_v20 = vmin.f32 %v2421_v16, 20.0  ;;  %v2425_v21 = vadd.f32 %v1817_v17, %v2398_v56 }
 0x1d7   : > { %v607_v22 = vpop.f32.mrf.mxu1 }
 0x1d8   : > { %1998 = vpow2.f32 %v679_v18  ;;  %v675_v24 = vmul.f32 1.442695, %v655_v20  ;;  %v658_v27 = vmin.f32 %v2425_v21, 20.0  ;;  %v2429_v28 = vadd.f32 %v2398_v56, %v607_v22 }
 0x1d9   : > { %v1820_v29 = vpop.f32.mrf.mxu1 }
 0x1da   : > { %2000 = vpow2.f32 %v675_v24  ;;  %v681_v31 = vmul.f32 1.442695, %v658_v27  ;;  %v656_v10 = vmin.f32 %v2429_v28, 20.0  ;;  %v2433_v26 = vadd.f32 %v1820_v29, %v2398_v56 }
 0x1db   : > { %v620_v55 = vpop.f32.mrf.mxu1 }
 0x1dc   : > { %2002 = vpow2.f32 %v681_v31  ;;  %v677_v36 = vmul.f32 1.442695, %v656_v10  ;;  %v661_v2 = vmin.f32 %v2433_v26, 20.0  ;;  %v2437_v15 = vadd.f32 %v2398_v56, %v620_v55 }
 0x1dd   : > { %v1991_v32 = vpop.eup %1990  ;;  %v1821_v59 = vpop.f32.mrf.mxu1 }
 0x1de   : > { %v701_v7 = vadd.f32 2.0, %v1991_v32  ;;  %2004 = vpow2.f32 %v677_v36  ;;  %v687_v0 = vmul.f32 1.442695, %v661_v2  ;;  %v659_v37 = vmin.f32 %v2437_v15, 20.0 }
 0x1df   : > { %v1993_v9 = vpop.eup %1992  ;;  %v2443_v33 = vadd.f32 %v1821_v59, %v2398_v56  ;;  %v623_v43 = vpop.f32.mrf.mxu1 }
 0x1e0   : > { %v2439_v14 = vmul.f32 %v1991_v32, %v701_v7  ;;  %v699_v41 = vadd.f32 2.0, %v1993_v9  ;;  %2006 = vpow2.f32 %v687_v0  ;;  %v683_v50 = vmul.f32 1.442695, %v659_v37 }
 0x1e1   : > { %v1995_v30 = vpop.eup %1994  ;;  %v662_v52 = vmin.f32 %v2443_v33, 20.0  ;;  %v2450_v19 = vadd.f32 %v2398_v56, %v623_v43  ;;  %v1824_v38 = vpop.f32.mrf.mxu1 }
 0x1e2   : > { %v749_v47 = vadd.f32 2.0, %v2439_v14  ;;  %v2446_v49 = vmul.f32 %v1993_v9, %v699_v41  ;;  %v702_v54 = vadd.f32 2.0, %v1995_v30  ;;  %v2458_v57 = vadd.f32 %v1824_v38, %v2398_v56 }
 0x1e3   : > { %v1997_v34 = vpop.eup %1996  ;;  %v689_v6 = vmul.f32 1.442695, %v662_v52  ;;  %v660_v23 = vmin.f32 %v2450_v19, 20.0  ;;  %v636_v25 = vpop.f32.mrf.mxu1 }
 0x1e4   : > { %2008 = vrcp.f32 %v749_v47  ;;  %v747_v61 = vadd.f32 2.0, %v2446_v49  ;;  %v2453_v42 = vmul.f32 %v1995_v30, %v702_v54  ;;  %v700_v53 = vadd.f32 2.0, %v1997_v34 }
 0x1e5   : > { %2010 = vpow2.f32 %v683_v50  ;;  %v1999_v60 = vpop.eup %1998  ;;  %v685_v3 = vmul.f32 1.442695, %v660_v23  ;;  %v2461_v4 = vadd.f32 %v2398_v56, %v636_v25  ;;  %v1825_v45 = vpop.f32.mrf.mxu1  ;;  %v665_v8 = vmin.f32 %v2458_v57, 20.0 }
 0x1e6   : > { %2012 = vrcp.f32 %v747_v61  ;;  %v750_v46 = vadd.f32 2.0, %v2453_v42  ;;  %v716_v62 = vmul.f32 %v1997_v34, %v700_v53  ;;  %v705_v5 = vadd.f32 2.0, %v1999_v60 }
 0x1e7   : > { %2014 = vpow2.f32 %v689_v6  ;;  %v2465_v11 = vadd.f32 %v1825_v45, %v2398_v56  ;;  %v2001_v51 = vpop.eup %2000  ;;  %v663_v63 = vmin.f32 %v2461_v4, 20.0  ;;  %v639_v35 = vpop.f32.mrf.mxu1  ;;  %v695_v17 = vmul.f32 1.442695, %v665_v8 }
 0x1e8   : > { %2016 = vrcp.f32 %v750_v46  ;;  %v748_v40 = vadd.f32 2.0, %v716_v62  ;;  %v2468_v12 = vmul.f32 %v1999_v60, %v705_v5  ;;  %v703_v13 = vadd.f32 2.0, %v2001_v51 }
 0x1e9   : > { %2018 = vpow2.f32 %v685_v3  ;;  %v666_v18 = vmin.f32 %v2465_v11, 20.0  ;;  %v2003_v20 = vpop.eup %2002  ;;  %v691_v22 = vmul.f32 1.442695, %v663_v63  ;;  %v2472_v24 = vadd.f32 %v2398_v56, %v639_v35 }
 0x1ea   : > { %2020 = vrcp.f32 %v748_v40  ;;  %v753_v27 = vadd.f32 2.0, %v2468_v12  ;;  %v2475_v29 = vmul.f32 %v2001_v51, %v703_v13  ;;  %v706_v31 = vadd.f32 2.0, %v2003_v20 }
 0x1eb   : > { %v2005_v10 = vpop.eup %2004  ;;  %2022 = vpow2.f32 %v695_v17  ;;  %v697_v32 = vmul.f32 1.442695, %v666_v18  ;;  %v664_v55 = vmin.f32 %v2472_v24, 20.0  ;;  %v734_v53 = vmul.f32 %v2453_v42, %v2409_v48 }
 0x1ec   : > { %v722_v7 = vmul.f32 %v2003_v20, %v706_v31  ;;  %v751_v36 = vadd.f32 2.0, %v2475_v29  ;;  %v704_v2 = vadd.f32 2.0, %v2005_v10  ;;  %2024 = vpow2.f32 %v691_v22 }
 0x1ed   : > { %v2007_v9 = vpop.eup %2006  ;;  %2026 = vrcp.f32 %v753_v27  ;;  %v693_v56 = vmul.f32 1.442695, %v664_v55  ;;  %v731_v25 = vmul.f32 %v2446_v49, %v2405_v1  ;;  %v732_v46 = vmul.f32 %v716_v62, %v2413_v39 }
 0x1ee   : > { %v754_v59 = vadd.f32 2.0, %v722_v7  ;;  %v720_v0 = vmul.f32 %v2005_v10, %v704_v2  ;;  %v709_v30 = vadd.f32 2.0, %v2007_v9  ;;  %2028 = vpow2.f32 %v697_v32 }
 0x1ef   : > { %v733_v5 = vmul.f32 %v2439_v14, %v2401_v58  ;;  %v738_v32 = vmul.f32 %v722_v7, %v2425_v21 }
 0x1f0   : > { %2030 = vrcp.f32 %v754_v59  ;;  %v752_v47 = vadd.f32 2.0, %v720_v0  ;;  %v2479_v54 = vmul.f32 %v2007_v9, %v709_v30  ;;  %v736_v2 = vmul.f32 %v720_v0, %v2429_v28 }
 0x1f1   : > { %v2009_v41 = vpop.eup %2008  ;;  %2032 = vrcp.f32 %v751_v36  ;;  %v735_v36 = vmul.f32 %v2475_v29, %v2421_v16 }
 0x1f2   : > { %v2011_v37 = vpop.eup %2010  ;;  %2034 = vpow2.f32 %v693_v56  ;;  %v757_v6 = vadd.f32 2.0, %v2479_v54  ;;  %v781_v35 = vmul.f32 %v2009_v41, %v733_v5  ;;  %v737_v56 = vmul.f32 %v2468_v12, %v2417_v44 }
 0x1f3   : > { %v2013_v43 = vpop.eup %2012  ;;  %v707_v34 = vadd.f32 2.0, %v2011_v37  ;;  %2036 = vrcp.f32 %v752_v47 }
 0x1f4   : > { %v2015_v50 = vpop.eup %2014  ;;  %v779_v40 = vmul.f32 %v2013_v43, %v731_v25  ;;  %2038 = vrcp.f32 %v757_v6 }
 0x1f5   : > { %v2017_v52 = vpop.eup %2016  ;;  %v2481_v38 = vmul.f32 %v2011_v37, %v707_v34  ;;  %v710_v23 = vadd.f32 2.0, %v2015_v50 }
 0x1f6   : > { %v2019_v61 = vpop.eup %2018  ;;  %v782_v8 = vmul.f32 %v2017_v52, %v734_v53 }
 0x1f7   : > { %v755_v60 = vadd.f32 2.0, %v2481_v38  ;;  %v708_v3 = vadd.f32 2.0, %v2019_v61  ;;  %v2021_v45 = vpop.eup %2020  ;;  %v726_v51 = vmul.f32 %v2015_v50, %v710_v23  ;;  %v739_v0 = vmul.f32 %v2481_v38, %v2437_v15 }
 0x1f8   : > { %v780_v63 = vmul.f32 %v2021_v45, %v732_v46  ;;  %v2023_v42 = vpop.eup %2022  ;;  %v796_v62 = vpack.c.bf16 %v782_v8, %v781_v35  ;;  %v741_v23 = vmul.f32 %v2479_v54, %v2433_v26 }
 0x1f9   : > { %v724_v48 = vmul.f32 %v2019_v61, %v708_v3  ;;  %v758_v13 = vadd.f32 2.0, %v726_v51  ;;  %2040 = vrcp.f32 %v755_v60  ;;  %v713_v39 = vadd.f32 2.0, %v2023_v42  ;;  %v2025_v49 = vpop.eup %2024 }
 0x1fa   : > { %v795_v17 = vpack.c.bf16 %v780_v63, %v779_v40  ;;  %v2027_v18 = vpop.eup %2026  ;;  %v711_v20 = vadd.f32 2.0, %v2025_v49  ;;  %v742_v44 = vmul.f32 %v726_v51, %v2443_v33 }
 0x1fb   : > { %v756_v1 = vadd.f32 2.0, %v724_v48  ;;  %2042 = vrcp.f32 %v758_v13  ;;  %v2029_v58 = vpop.eup %2028  ;;  %v729_v22 = vmul.f32 %v2023_v42, %v713_v39  ;;  %v785_v52 = vmul.f32 %v2027_v18, %v737_v56 }
 0x1fc   : > { %1834 = vmatprep.mubr.msk.bf16.mxu0 %vm529_vm3, %v795_v17  ;;  %v727_v27 = vmul.f32 %v2025_v49, %v711_v20  ;;  %v714_v31 = vadd.f32 2.0, %v2029_v58  ;;  %v740_v53 = vmul.f32 %v724_v48, %v2450_v19  ;;  %v2531_v17 = vld [vmem:[%s2833_s2 + $0x2] ss:$0 sm:$0xff] }
 0x1fd   : > { %2044 = vrcp.f32 %v756_v1  ;;  %1835 = vmatmul.mubr.msk.bf16.vlgmr.msra.gmra.mxu0 %vm529_vm3, %v796_v62  ;;  %v2031_v14 = vpop.eup %2030  ;;  %v761_v34 = vadd.f32 2.0, %v729_v22  ;;  %v745_v54 = vmul.f32 %v729_v22, %v2458_v57  ;;  %v1919_v57 = vld [vmem:[%s2832_s1 + $0x58] sm:$0xff]  }
 0x1fe   : > { %v2033_v10 = vpop.eup %2032  ;;  %v730_v9 = vmul.f32 %v2029_v58, %v714_v31  ;;  %v786_v41 = vmul.f32 %v2031_v14, %v738_v32  ;;  %v759_v30 = vadd.f32 2.0, %v727_v27  ;;  %v743_v19 = vmul.f32 %v727_v27, %v2461_v4  ;;  %v1920_v4 = vld [vmem:[%s2832_s1 + $0x50] sm:$0xff]  }
 0x1ff   : > { %v2035_v55 = vpop.eup %2034  ;;  %v783_v43 = vmul.f32 %v2033_v10, %v735_v36 }
 0x200   : > { %v2037_v59 = vpop.eup %2036  ;;  %v712_v37 = vadd.f32 2.0, %v2035_v55  ;;  %v762_v50 = vadd.f32 2.0, %v730_v9  ;;  %v798_v61 = vpack.c.bf16 %v786_v41, %v785_v52  ;;  %v746_v15 = vmul.f32 %v730_v9, %v2465_v11  ;;  %v1918_v11 = vld [vmem:[%s2832_s1 + $0x60] sm:$0xff]  }
 0x201   : > { %v784_v47 = vmul.f32 %v2037_v59, %v736_v2  ;;  %v2039_v28 = vpop.eup %2038  ;;  %1850 = vmatprep.subr.bf16.mxu1 %v1918_v11 }
 0x202   : > { %v728_v21 = vmul.f32 %v2035_v55, %v712_v37  ;;  %2046 = vrcp.f32 %v762_v50  ;;  %v789_v3 = vmul.f32 %v2039_v28, %v741_v23  ;;  %1851 = vmatpush3.bf16.msra.mxu1 %v1918_v11 }
 0x203   : > { %v797_v7 = vpack.c.bf16 %v784_v47, %v783_v43  ;;  %2048 = vrcp.f32 %v759_v30  ;;  %1852 = vmatprep.subr.bf16.mxu1 %v1919_v57 }
 0x204   : > { %v760_v16 = vadd.f32 2.0, %v728_v21  ;;  %2050 = vrcp.f32 %v761_v34  ;;  %v744_v51 = vmul.f32 %v728_v21, %v2472_v24  ;;  %v1921_v24 = vld [vmem:[%s2832_s1 + $0x48] sm:$0xff]  }
 0x205   : > { %1838 = vmatprep.mubr.msk.bf16.mxu0 %vm529_vm3, %v797_v7 }
 0x206   : > { %v2041_v29 = vpop.eup %2040  ;;  %2052 = vrcp.f32 %v760_v16  ;;  %1839 = vmatmul.mubr.msk.bf16.gmra.mxu0 %vm529_vm3, %v798_v61  ;;  %1853 = vmatpush3.bf16.msra.mxu1 %v1919_v57 }
 0x207   : > { %v787_v46 = vmul.f32 %v2041_v29, %v739_v0  ;;  %1854 = vmatprep.subr.bf16.mxu1 %v1920_v4 }
 0x208   : > { %v2043_v12 = vpop.eup %2042 }
 0x209   : > { %v790_v25 = vmul.f32 %v2043_v12, %v742_v44 }
 0x20a   : > { %v2045_v6 = vpop.eup %2044  ;;  %1855 = vmatpush3.bf16.msra.mxu1 %v1920_v4 }
 0x20b   : > { %v788_v60 = vmul.f32 %v2045_v6, %v740_v53  ;;  %v800_v5 = vpack.c.bf16 %v790_v25, %v789_v3  ;;  %1856 = vmatprep.subr.bf16.mxu1 %v1921_v24 }
 0x20d   : > { %v799_v45 = vpack.c.bf16 %v788_v60, %v787_v46 }
 0x20e   : > { %1857 = vmatpush3.bf16.msra.mxu1 %v1921_v24 }
 0x20f   : > { %1842 = vmatprep.mubr.msk.bf16.mxu0 %vm529_vm3, %v799_v45  ;;  %v2047_v33 = vpop.eup %2046 }
 0x210   : > { %1843 = vmatmul.mubr.msk.bf16.gmra.mxu0 %vm529_vm3, %v800_v5  ;;  %v2049_v8 = vpop.eup %2048  ;;  %v794_v40 = vmul.f32 %v2047_v33, %v746_v15 }
 0x211   : > { %v2051_v38 = vpop.eup %2050  ;;  %v791_v63 = vmul.f32 %v2049_v8, %v743_v19 }
 0x212   : > { %v793_v42 = vmul.f32 %v2051_v38, %v745_v54 }
 0x213   : > { %v2053_v26 = vpop.eup %2052 }
 0x214   : > { %v792_v48 = vmul.f32 %v2053_v26, %v744_v51  ;;  %v802_v13 = vpack.c.bf16 %v794_v40, %v793_v42 }
 0x216   : > { %v801_v35 = vpack.c.bf16 %v792_v48, %v791_v63 }
 0x218   : > { %1846 = vmatprep.mubr.msk.bf16.mxu0 %vm529_vm3, %v801_v35 }
 0x219   : > { %1847 = vmatmul.mubr.msk.bf16.gmra.mxu0 %vm529_vm3, %v802_v13 }
 0x2bd   : > { %v1836_v1 = vpop.f32.mrf.mxu0 }
 0x2be   : > { %v2534_v39 = vadd.f32 %v1836_v1, %v2531_v17 }
 0x2bf   : > { %v898_v49 = vpop.f32.mrf.mxu0 }
 0x2c0   : > { %v963_v62 = vmin.f32 %v2534_v39, 20.0  ;;  %v2538_v18 = vadd.f32 %v2531_v17, %v898_v49 }
 0x2c1   : > { %v1837_v20 = vpop.f32.mrf.mxu0 }
 0x2c2   : > { %v981_v58 = vmul.f32 1.442695, %v963_v62  ;;  %v961_v14 = vmin.f32 %v2538_v18, 20.0  ;;  %v2542_v22 = vadd.f32 %v1837_v20, %v2531_v17 }
 0x2c3   : > { %v901_v27 = vpop.f32.mrf.mxu0 }
 0x2c4   : > { %2054 = vpow2.f32 %v981_v58  ;;  %v977_v31 = vmul.f32 1.442695, %v961_v14  ;;  %v964_v10 = vmin.f32 %v2542_v22, 20.0  ;;  %v2546_v32 = vadd.f32 %v2531_v17, %v901_v27 }
 0x2c6   : > { %2056 = vpow2.f32 %v977_v31  ;;  %v983_v55 = vmul.f32 1.442695, %v964_v10  ;;  %v962_v36 = vmin.f32 %v2546_v32, 20.0  ;;  %v1840_v2 = vpop.f32.mrf.mxu0 }
 0x2c7   : > { %v2550_v59 = vadd.f32 %v1840_v2, %v2531_v17 }
 0x2c8   : > { %2058 = vpow2.f32 %v983_v55  ;;  %v979_v9 = vmul.f32 1.442695, %v962_v36  ;;  %v914_v56 = vpop.f32.mrf.mxu0 }
 0x2c9   : > { %v967_v41 = vmin.f32 %v2550_v59, 20.0  ;;  %v2554_v30 = vadd.f32 %v2531_v17, %v914_v56 }
 0x2ca   : > { %2060 = vpow2.f32 %v979_v9  ;;  %v1841_v37 = vpop.f32.mrf.mxu0 }
 0x2cb   : > { %v989_v43 = vmul.f32 1.442695, %v967_v41  ;;  %v965_v47 = vmin.f32 %v2554_v30, 20.0  ;;  %v2558_v34 = vadd.f32 %v1841_v37, %v2531_v17 }
 0x2cc   : > { %v917_v50 = vpop.f32.mrf.mxu0 }
 0x2cd   : > { %2062 = vpow2.f32 %v989_v43  ;;  %v985_v52 = vmul.f32 1.442695, %v965_v47  ;;  %v968_v21 = vmin.f32 %v2558_v34, 20.0  ;;  %v2562_v7 = vadd.f32 %v2531_v17, %v917_v50 }
 0x2cf   : > { %2064 = vpow2.f32 %v985_v52  ;;  %v991_v16 = vmul.f32 1.442695, %v968_v21  ;;  %v966_v28 = vmin.f32 %v2562_v7, 20.0 }
 0x2d0   : > { %v1844_v61 = vpop.f32.mrf.mxu0 }
 0x2d1   : > { %v2566_v29 = vadd.f32 %v1844_v61, %v2531_v17  ;;  %v2055_v44 = vpop.eup %2054  ;;  %2066 = vpow2.f32 %v991_v16  ;;  %v987_v53 = vmul.f32 1.442695, %v966_v28 }
 0x2d2   : > { %v930_v12 = vpop.f32.mrf.mxu0  ;;  %v1011_v0 = vadd.f32 2.0, %v2055_v44 }
 0x2d3   : > { %v971_v6 = vmin.f32 %v2566_v29, 20.0  ;;  %v2057_v23 = vpop.eup %2056  ;;  %v2570_v25 = vadd.f32 %v2531_v17, %v930_v12  ;;  %2068 = vpow2.f32 %v987_v53 }
 0x2d4   : > { %v1845_v46 = vpop.f32.mrf.mxu0  ;;  %v1009_v60 = vadd.f32 2.0, %v2057_v23  ;;  %v2576_v15 = vmul.f32 %v2055_v44, %v1011_v0 }
 0x2d5   : > { %v997_v3 = vmul.f32 1.442695, %v971_v6  ;;  %v2059_v45 = vpop.eup %2058  ;;  %v969_v5 = vmin.f32 %v2570_v25, 20.0  ;;  %v2574_v33 = vadd.f32 %v1845_v46, %v2531_v17 }
 0x2d6   : > { %v933_v8 = vpop.f32.mrf.mxu0  ;;  %v2578_v38 = vmul.f32 %v2057_v23, %v1009_v60  ;;  %v1012_v19 = vadd.f32 2.0, %v2059_v45  ;;  %v1059_v11 = vadd.f32 2.0, %v2576_v15 }
 0x2d7   : > { %v2061_v51 = vpop.eup %2060  ;;  %2070 = vpow2.f32 %v997_v3  ;;  %v993_v26 = vmul.f32 1.442695, %v969_v5  ;;  %v972_v54 = vmin.f32 %v2574_v33, 20.0  ;;  %v2582_v40 = vadd.f32 %v2531_v17, %v933_v8 }
 0x2d8   : > { %v1057_v63 = vadd.f32 2.0, %v2578_v38  ;;  %v2585_v48 = vmul.f32 %v2059_v45, %v1012_v19  ;;  %v1010_v42 = vadd.f32 2.0, %v2061_v51 }
 0x2d9   : > { %2072 = vpow2.f32 %v993_v26  ;;  %v999_v35 = vmul.f32 1.442695, %v972_v54  ;;  %v970_v13 = vmin.f32 %v2582_v40, 20.0  ;;  %v1848_v4 = vpop.f32.mrf.mxu0 }
 0x2da   : > { %2074 = vrcp.f32 %v1057_v63  ;;  %v1060_v57 = vadd.f32 2.0, %v2585_v48  ;;  %v2063_v24 = vpop.eup %2062  ;;  %v1026_v1 = vmul.f32 %v2061_v51, %v1010_v42  ;;  %v2591_v62 = vadd.f32 %v1848_v4, %v2531_v17 }
 0x2db   : > { %2076 = vpow2.f32 %v999_v35  ;;  %v995_v49 = vmul.f32 1.442695, %v970_v13  ;;  %v1015_v20 = vadd.f32 2.0, %v2063_v24  ;;  %v946_v58 = vpop.f32.mrf.mxu0  ;;  %v1044_v35 = vmul.f32 %v2585_v48, %v2542_v22 }
 0x2dc   : > { %2078 = vrcp.f32 %v1060_v57  ;;  %v2065_v14 = vpop.eup %2064  ;;  %v1058_v27 = vadd.f32 2.0, %v1026_v1  ;;  %v975_v31 = vmin.f32 %v2591_v62, 20.0  ;;  %v2597_v36 = vadd.f32 %v2531_v17, %v946_v58 }
 0x2dd   : > { %2080 = vpow2.f32 %v995_v49  ;;  %v2594_v10 = vmul.f32 %v2063_v24, %v1015_v20  ;;  %v1013_v55 = vadd.f32 2.0, %v2065_v14  ;;  %v1849_v2 = vpop.f32.mrf.mxu0  ;;  %v1041_v4 = vmul.f32 %v2578_v38, %v2538_v18 }
 0x2de   : > { %2082 = vrcp.f32 %v1059_v11  ;;  %v2067_v9 = vpop.eup %2066  ;;  %v1005_v56 = vmul.f32 1.442695, %v975_v31  ;;  %v2600_v41 = vadd.f32 %v1849_v2, %v2531_v17  ;;  %v973_v21 = vmin.f32 %v2597_v36, 20.0 }
 0x2df   : > { %2084 = vrcp.f32 %v1058_v27  ;;  %v1063_v37 = vadd.f32 2.0, %v2594_v10  ;;  %v2603_v43 = vmul.f32 %v2065_v14, %v1013_v55  ;;  %v1016_v47 = vadd.f32 2.0, %v2067_v9  ;;  %v949_v50 = vpop.f32.mrf.mxu0 }
 0x2e0   : > { %v2069_v52 = vpop.eup %2068  ;;  %2086 = vpow2.f32 %v1005_v56  ;;  %v976_v61 = vmin.f32 %v2600_v41, 20.0  ;;  %v2608_v16 = vadd.f32 %v2531_v17, %v949_v50  ;;  %v1001_v0 = vmul.f32 1.442695, %v973_v21 }
 0x2e1   : > { %v1032_v28 = vmul.f32 %v2067_v9, %v1016_v47  ;;  %v1061_v44 = vadd.f32 2.0, %v2603_v43  ;;  %v1014_v12 = vadd.f32 2.0, %v2069_v52  ;;  %2088 = vrcp.f32 %v1063_v37 }
 0x2e2   : > { %v974_v53 = vmin.f32 %v2608_v16, 20.0  ;;  %v1007_v46 = vmul.f32 1.442695, %v976_v61  ;;  %2090 = vpow2.f32 %v1001_v0  ;;  %v1042_v24 = vmul.f32 %v1026_v1, %v2546_v32 }
 0x2e3   : > { %v1064_v23 = vadd.f32 2.0, %v1032_v28  ;;  %v1030_v60 = vmul.f32 %v2069_v52, %v1014_v12  ;;  %v1043_v14 = vmul.f32 %v2576_v15, %v2534_v39  ;;  %v1048_v52 = vmul.f32 %v1032_v28, %v2558_v34 }
 0x2e4   : > { %v2071_v6 = vpop.eup %2070  ;;  %v1003_v5 = vmul.f32 1.442695, %v974_v53  ;;  %v1045_v61 = vmul.f32 %v2603_v43, %v2554_v30 }
 0x2e5   : > { %v1019_v3 = vadd.f32 2.0, %v2071_v6  ;;  %2092 = vrcp.f32 %v1064_v23  ;;  %v1062_v17 = vadd.f32 2.0, %v1030_v60 }
 0x2e6   : > { %v2073_v45 = vpop.eup %2072  ;;  %2094 = vrcp.f32 %v1061_v44  ;;  %v1046_v44 = vmul.f32 %v1030_v60, %v2562_v7 }
 0x2e7   : > { %v2075_v8 = vpop.eup %2074  ;;  %v2612_v19 = vmul.f32 %v2071_v6, %v1019_v3  ;;  %v1017_v51 = vadd.f32 2.0, %v2073_v45  ;;  %2096 = vpow2.f32 %v1007_v46  ;;  %v1047_v6 = vmul.f32 %v2594_v10, %v2550_v59 }
 0x2e8   : > { %v2077_v26 = vpop.eup %2076  ;;  %2098 = vrcp.f32 %v1062_v17  ;;  %v1089_v22 = vmul.f32 %v2075_v8, %v1041_v4 }
 0x2e9   : > { %v2079_v54 = vpop.eup %2078  ;;  %v2614_v63 = vmul.f32 %v2073_v45, %v1017_v51  ;;  %v1067_v13 = vadd.f32 2.0, %v2612_v19  ;;  %v1020_v11 = vadd.f32 2.0, %v2077_v26  ;;  %2100 = vpow2.f32 %v1003_v5 }
 0x2ea   : > { %v2081_v42 = vpop.eup %2080  ;;  %v1092_v27 = vmul.f32 %v2079_v54, %v1044_v35 }
 0x2eb   : > { %v2083_v57 = vpop.eup %2082  ;;  %v1065_v49 = vadd.f32 2.0, %v2614_v63  ;;  %v1018_v20 = vadd.f32 2.0, %v2081_v42  ;;  %v1036_v31 = vmul.f32 %v2077_v26, %v1020_v11  ;;  %2102 = vrcp.f32 %v1067_v13 }
 0x2ec   : > { %v2085_v58 = vpop.eup %2084  ;;  %v1091_v9 = vmul.f32 %v2083_v57, %v1043_v14  ;;  %v1049_v35 = vmul.f32 %v2614_v63, %v2570_v25  ;;  %v1051_v57 = vmul.f32 %v2612_v19, %v2566_v29 }
 0x2ed   : > { %v1090_v48 = vmul.f32 %v2085_v58, %v1042_v24  ;;  %v1034_v55 = vmul.f32 %v2081_v42, %v1018_v20  ;;  %v2087_v2 = vpop.eup %2086  ;;  %v1068_v56 = vadd.f32 2.0, %v1036_v31  ;;  %2104 = vrcp.f32 %v1065_v49 }
 0x2ee   : > { %v1106_v32 = vpack.c.bf16 %v1092_v27, %v1091_v9  ;;  %v2089_v38 = vpop.eup %2088  ;;  %v1023_v1 = vadd.f32 2.0, %v2087_v2  ;;  %v1052_v59 = vmul.f32 %v1036_v31, %v2574_v33 }
 0x2ef   : > { %v1105_v37 = vpack.c.bf16 %v1090_v48, %v1089_v22  ;;  %v1066_v18 = vadd.f32 2.0, %v1034_v55  ;;  %2106 = vrcp.f32 %v1068_v56  ;;  %v2091_v39 = vpop.eup %2090  ;;  %v1095_v17 = vmul.f32 %v2089_v38, %v1047_v6 }
 0x2f0   : > { %v1021_v47 = vadd.f32 2.0, %v2091_v39  ;;  %v1039_v12 = vmul.f32 %v2087_v2, %v1023_v1  ;;  %v1050_v13 = vmul.f32 %v1034_v55, %v2582_v40 }
 0x2f1   : > { %2108 = vrcp.f32 %v1066_v18  ;;  %1858 = vmatprep.mubr.msk.bf16.mxu1 %vm529_vm3, %v1105_v37  ;;  %v2664_v37 = vld [vmem:[%s2833_s2 + $0x3] ss:$0 sm:$0xff] }
 0x2f2   : > { %1859 = vmatmul.mubr.msk.bf16.vlgmr.msra.gmra.mxu1 %vm529_vm3, %v1106_v32  ;;  %v2093_v15 = vpop.eup %2092  ;;  %v1037_v0 = vmul.f32 %v2091_v39, %v1021_v47  ;;  %v1071_v26 = vadd.f32 2.0, %v1039_v12  ;;  %v1055_v31 = vmul.f32 %v1039_v12, %v2591_v62  ;;  %v1923_v62 = vld [vmem:[%s2832_s1 + $0x78] sm:$0xff]  }
 0x2f3   : > { %v2095_v50 = vpop.eup %2094  ;;  %v1096_v23 = vmul.f32 %v2093_v15, %v1048_v52 }
 0x2f4   : > { %v2097_v21 = vpop.eup %2096  ;;  %v1093_v45 = vmul.f32 %v2095_v50, %v1045_v61  ;;  %v1069_v8 = vadd.f32 2.0, %v1037_v0  ;;  %v1053_v27 = vmul.f32 %v1037_v0, %v2597_v36  ;;  %v1924_v36 = vld [vmem:[%s2832_s1 + $0x70] sm:$0xff]  }
 0x2f5   : > { %v2099_v53 = vpop.eup %2098  ;;  %v1024_v46 = vadd.f32 2.0, %v2097_v21  ;;  %v1108_v30 = vpack.c.bf16 %v1096_v23, %v1095_v17 }
 0x2f6   : > { %v2101_v3 = vpop.eup %2100  ;;  %v1094_v5 = vmul.f32 %v2099_v53, %v1046_v44  ;;  %2110 = vrcp.f32 %v1069_v8 }
 0x2f7   : > { %v1040_v34 = vmul.f32 %v2097_v21, %v1024_v46  ;;  %v1022_v28 = vadd.f32 2.0, %v2101_v3 }
 0x2f8   : > { %v1107_v51 = vpack.c.bf16 %v1094_v5, %v1093_v45  ;;  %v2103_v60 = vpop.eup %2102 }
 0x2f9   : > { %v1072_v43 = vadd.f32 2.0, %v1040_v34  ;;  %v1038_v7 = vmul.f32 %v2101_v3, %v1022_v28  ;;  %v1099_v33 = vmul.f32 %v2103_v60, %v1051_v57  ;;  %v1056_v40 = vmul.f32 %v1040_v34, %v2600_v41  ;;  %v1922_v41 = vld [vmem:[%s2832_s1 + $0x80] sm:$0xff]  }
 0x2fa   : > { %1862 = vmatprep.mubr.msk.bf16.mxu1 %vm529_vm3, %v1107_v51  ;;  %v2105_v54 = vpop.eup %2104  ;;  %1874 = vmatprep.subr.bf16.mxu0 %v1922_v41 }
 0x2fb   : > { %2112 = vrcp.f32 %v1072_v43  ;;  %v1070_v10 = vadd.f32 2.0, %v1038_v7  ;;  %1863 = vmatmul.mubr.msk.bf16.gmra.mxu1 %vm529_vm3, %v1108_v30  ;;  %v1097_v24 = vmul.f32 %v2105_v54, %v1049_v35  ;;  %v1054_v29 = vmul.f32 %v1038_v7, %v2608_v16  ;;  %1875 = vmatpush3.bf16.msra.mxu0 %v1922_v41  ;;  %v1925_v16 = vld [vmem:[%s2832_s1 + $0x68] sm:$0xff]  }
 0x2fc   : > { %v2107_v42 = vpop.eup %2106  ;;  %2114 = vrcp.f32 %v1071_v26  ;;  %1876 = vmatprep.subr.bf16.mxu0 %v1923_v62 }
 0x2fd   : > { %v1100_v4 = vmul.f32 %v2107_v42, %v1052_v59  ;;  %2116 = vrcp.f32 %v1070_v10 }
 0x2fe   : > { %v2109_v11 = vpop.eup %2108 }
 0x2ff   : > { %v1098_v49 = vmul.f32 %v2109_v11, %v1050_v13  ;;  %v1110_v58 = vpack.c.bf16 %v1100_v4, %v1099_v33  ;;  %1877 = vmatpush3.bf16.msra.mxu0 %v1923_v62 }
 0x300   : > { %1878 = vmatprep.subr.bf16.mxu0 %v1924_v36 }
 0x301   : > { %v1109_v20 = vpack.c.bf16 %v1098_v49, %v1097_v24 }
 0x303   : > { %1866 = vmatprep.mubr.msk.bf16.mxu1 %vm529_vm3, %v1109_v20  ;;  %v2111_v14 = vpop.eup %2110  ;;  %1879 = vmatpush3.bf16.msra.mxu0 %v1924_v36 }
 0x304   : > { %1867 = vmatmul.mubr.msk.bf16.gmra.mxu1 %vm529_vm3, %v1110_v58  ;;  %v1101_v48 = vmul.f32 %v2111_v14, %v1053_v27  ;;  %1880 = vmatprep.subr.bf16.mxu0 %v1925_v16 }
 0x307   : > { %1881 = vmatpush3.bf16.msra.mxu0 %v1925_v16 }
 0x308   : > { %v2113_v25 = vpop.eup %2112 }
 0x309   : > { %v2115_v63 = vpop.eup %2114  ;;  %v1104_v22 = vmul.f32 %v2113_v25, %v1056_v40 }
 0x30a   : > { %v2117_v19 = vpop.eup %2116  ;;  %v1103_v2 = vmul.f32 %v2115_v63, %v1055_v31 }
 0x30b   : > { %v1102_v55 = vmul.f32 %v2117_v19, %v1054_v29 }
 0x30c   : > { %v1112_v56 = vpack.c.bf16 %v1104_v22, %v1103_v2 }
 0x30d   : > { %v1111_v9 = vpack.c.bf16 %v1102_v55, %v1101_v48 }
 0x30f   : > { %1870 = vmatprep.mubr.msk.bf16.mxu1 %vm529_vm3, %v1111_v9 }
 0x310   : > { %1871 = vmatmul.mubr.msk.bf16.gmra.mxu1 %vm529_vm3, %v1112_v56 }
 0x3b2   : > { %v1860_v18 = vpop.f32.mrf.mxu1 }
 0x3b3   : > { %v2667_v32 = vadd.f32 %v1860_v18, %v2664_v37 }
 0x3b4   : > { %v1208_v38 = vpop.f32.mrf.mxu1 }
 0x3b5   : > { %v1273_v1 = vmin.f32 %v2667_v32, 20.0  ;;  %v2671_v39 = vadd.f32 %v2664_v37, %v1208_v38 }
 0x3b6   : > { %v1861_v15 = vpop.f32.mrf.mxu1 }
 0x3b7   : > { %v1291_v47 = vmul.f32 1.442695, %v1273_v1  ;;  %v1271_v50 = vmin.f32 %v2671_v39, 20.0  ;;  %v2675_v52 = vadd.f32 %v1861_v15, %v2664_v37 }
 0x3b8   : > { %v1211_v21 = vpop.f32.mrf.mxu1 }
 0x3b9   : > { %2118 = vpow2.f32 %v1291_v47  ;;  %v1287_v61 = vmul.f32 1.442695, %v1271_v50  ;;  %v1274_v44 = vmin.f32 %v2675_v52, 20.0  ;;  %v2679_v12 = vadd.f32 %v2664_v37, %v1211_v21 }
 0x3bb   : > { %2120 = vpow2.f32 %v1287_v61  ;;  %v1293_v0 = vmul.f32 1.442695, %v1274_v44  ;;  %v1272_v53 = vmin.f32 %v2679_v12, 20.0  ;;  %v1864_v6 = vpop.f32.mrf.mxu1 }
 0x3bc   : > { %v2683_v46 = vadd.f32 %v1864_v6, %v2664_v37 }
 0x3bd   : > { %2122 = vpow2.f32 %v1293_v0  ;;  %v1289_v23 = vmul.f32 1.442695, %v1272_v53  ;;  %v1224_v3 = vpop.f32.mrf.mxu1 }
 0x3be   : > { %v1277_v45 = vmin.f32 %v2683_v46, 20.0  ;;  %v2687_v5 = vadd.f32 %v2664_v37, %v1224_v3 }
 0x3bf   : > { %2124 = vpow2.f32 %v1289_v23  ;;  %v1865_v8 = vpop.f32.mrf.mxu1 }
 0x3c0   : > { %v1299_v17 = vmul.f32 1.442695, %v1277_v45  ;;  %v1275_v34 = vmin.f32 %v2687_v5, 20.0  ;;  %v2691_v28 = vadd.f32 %v1865_v8, %v2664_v37 }
 0x3c1   : > { %v1227_v51 = vpop.f32.mrf.mxu1 }
 0x3c2   : > { %2126 = vpow2.f32 %v1299_v17  ;;  %v1295_v26 = vmul.f32 1.442695, %v1275_v34  ;;  %v1278_v30 = vmin.f32 %v2691_v28, 20.0  ;;  %v2695_v43 = vadd.f32 %v2664_v37, %v1227_v51 }
 0x3c4   : > { %v1868_v7 = vpop.f32.mrf.mxu1  ;;  %2128 = vpow2.f32 %v1295_v26  ;;  %v1301_v60 = vmul.f32 1.442695, %v1278_v30  ;;  %v1276_v54 = vmin.f32 %v2695_v43, 20.0 }
 0x3c5   : > { %v2699_v59 = vadd.f32 %v1868_v7, %v2664_v37 }
 0x3c6   : > { %v2119_v10 = vpop.eup %2118  ;;  %v1240_v42 = vpop.f32.mrf.mxu1  ;;  %2130 = vpow2.f32 %v1301_v60  ;;  %v1297_v13 = vmul.f32 1.442695, %v1276_v54 }
 0x3c7   : > { %v1321_v35 = vadd.f32 2.0, %v2119_v10  ;;  %v1281_v11 = vmin.f32 %v2699_v59, 20.0  ;;  %v2703_v4 = vadd.f32 %v2664_v37, %v1240_v42 }
 0x3c8   : > { %v2121_v57 = vpop.eup %2120  ;;  %v1869_v24 = vpop.f32.mrf.mxu1  ;;  %2132 = vpow2.f32 %v1297_v13 }
 0x3c9   : > { %v1319_v49 = vadd.f32 2.0, %v2121_v57  ;;  %v1307_v33 = vmul.f32 1.442695, %v1281_v11  ;;  %v1279_v58 = vmin.f32 %v2703_v4, 20.0  ;;  %v2707_v14 = vadd.f32 %v1869_v24, %v2664_v37 }
 0x3ca   : > { %v2123_v20 = vpop.eup %2122  ;;  %v1243_v25 = vpop.f32.mrf.mxu1  ;;  %v2709_v40 = vmul.f32 %v2119_v10, %v1321_v35 }
 0x3cb   : > { %v2711_v63 = vmul.f32 %v2121_v57, %v1319_v49  ;;  %v1322_v27 = vadd.f32 2.0, %v2123_v20  ;;  %2134 = vpow2.f32 %v1307_v33  ;;  %v1303_v19 = vmul.f32 1.442695, %v1279_v58 }
 0x3cc   : > { %v2125_v29 = vpop.eup %2124  ;;  %v1282_v31 = vmin.f32 %v2707_v14, 20.0  ;;  %v2715_v22 = vadd.f32 %v2664_v37, %v1243_v25  ;;  %v1369_v41 = vadd.f32 2.0, %v2709_v40 }
 0x3cd   : > { %v1367_v48 = vadd.f32 2.0, %v2711_v63  ;;  %v2718_v55 = vmul.f32 %v2123_v20, %v1322_v27  ;;  %v1320_v2 = vadd.f32 2.0, %v2125_v29  ;;  %2136 = vpow2.f32 %v1303_v19 }
 0x3ce   : > { %v1309_v9 = vmul.f32 1.442695, %v1282_v31  ;;  %v1280_v56 = vmin.f32 %v2715_v22, 20.0 }
 0x3cf   : > { %2138 = vrcp.f32 %v1367_v48  ;;  %v1370_v62 = vadd.f32 2.0, %v2718_v55  ;;  %v2127_v36 = vpop.eup %2126  ;;  %v1336_v16 = vmul.f32 %v2125_v29, %v1320_v2 }
 0x3d0   : > { %2140 = vpow2.f32 %v1309_v9  ;;  %v1305_v18 = vmul.f32 1.442695, %v1280_v56  ;;  %v1325_v38 = vadd.f32 2.0, %v2127_v36  ;;  %v1872_v1 = vpop.f32.mrf.mxu1  ;;  %v1354_v9 = vmul.f32 %v2718_v55, %v2675_v52 }
 0x3d1   : > { %2142 = vrcp.f32 %v1370_v62  ;;  %v2129_v15 = vpop.eup %2128  ;;  %v1368_v47 = vadd.f32 2.0, %v1336_v16  ;;  %v2724_v50 = vadd.f32 %v1872_v1, %v2664_v37 }
 0x3d2   : > { %2144 = vpow2.f32 %v1305_v18  ;;  %v2726_v21 = vmul.f32 %v2127_v36, %v1325_v38  ;;  %v1323_v61 = vadd.f32 2.0, %v2129_v15  ;;  %v1256_v44 = vpop.f32.mrf.mxu1  ;;  %v1351_v36 = vmul.f32 %v2711_v63, %v2671_v39 }
 0x3d3   : > { %2146 = vrcp.f32 %v1369_v41  ;;  %v2131_v0 = vpop.eup %2130  ;;  %v1285_v53 = vmin.f32 %v2724_v50, 20.0  ;;  %v2730_v6 = vadd.f32 %v2664_v37, %v1256_v44  ;;  %v1352_v18 = vmul.f32 %v1336_v16, %v2679_v12 }
 0x3d4   : > { %2148 = vrcp.f32 %v1368_v47  ;;  %v1373_v23 = vadd.f32 2.0, %v2726_v21  ;;  %v2733_v3 = vmul.f32 %v2129_v15, %v1323_v61  ;;  %v1326_v45 = vadd.f32 2.0, %v2131_v0  ;;  %v1873_v8 = vpop.f32.mrf.mxu1 }
 0x3d5   : > { %v2133_v17 = vpop.eup %2132  ;;  %v1315_v34 = vmul.f32 1.442695, %v1285_v53  ;;  %v1283_v51 = vmin.f32 %v2730_v6, 20.0  ;;  %v2737_v26 = vadd.f32 %v1873_v8, %v2664_v37  ;;  %v1353_v47 = vmul.f32 %v2709_v40, %v2667_v32 }
 0x3d6   : > { %v1371_v30 = vadd.f32 2.0, %v2733_v3  ;;  %v2740_v7 = vmul.f32 %v2131_v0, %v1326_v45  ;;  %v1259_v60 = vpop.f32.mrf.mxu1  ;;  %v1324_v54 = vadd.f32 2.0, %v2133_v17 }
 0x3d7   : > { %2150 = vpow2.f32 %v1315_v34  ;;  %v1311_v10 = vmul.f32 1.442695, %v1283_v51  ;;  %v1286_v42 = vmin.f32 %v2737_v26, 20.0  ;;  %v2745_v11 = vadd.f32 %v2664_v37, %v1259_v60 }
 0x3d8   : > { %v2135_v35 = vpop.eup %2134  ;;  %2152 = vrcp.f32 %v1373_v23  ;;  %v1374_v13 = vadd.f32 2.0, %v2740_v7  ;;  %v1340_v57 = vmul.f32 %v2133_v17, %v1324_v54  ;;  %v1358_v51 = vmul.f32 %v2740_v7, %v2691_v28 }
 0x3d9   : > { %v1329_v24 = vadd.f32 2.0, %v2135_v35  ;;  %2154 = vpow2.f32 %v1311_v10  ;;  %v1317_v49 = vmul.f32 1.442695, %v1286_v42  ;;  %v1284_v20 = vmin.f32 %v2745_v11, 20.0 }
 0x3da   : > { %v2137_v33 = vpop.eup %2136  ;;  %2156 = vrcp.f32 %v1374_v13  ;;  %v1372_v25 = vadd.f32 2.0, %v1340_v57  ;;  %v1355_v60 = vmul.f32 %v2733_v3, %v2687_v5  ;;  %v1356_v54 = vmul.f32 %v1340_v57, %v2695_v43 }
 0x3db   : > { %2158 = vrcp.f32 %v1371_v30  ;;  %v2748_v27 = vmul.f32 %v2135_v35, %v1329_v24  ;;  %v1327_v29 = vadd.f32 2.0, %v2137_v33  ;;  %v1313_v31 = vmul.f32 1.442695, %v1284_v20 }
 0x3dc   : > { %v2139_v58 = vpop.eup %2138  ;;  %2160 = vpow2.f32 %v1317_v49  ;;  %v1357_v13 = vmul.f32 %v2726_v21, %v2683_v46 }
 0x3dd   : > { %v2141_v19 = vpop.eup %2140  ;;  %2162 = vrcp.f32 %v1372_v25  ;;  %v2750_v37 = vmul.f32 %v2137_v33, %v1327_v29  ;;  %v1377_v56 = vadd.f32 2.0, %v2748_v27  ;;  %v1399_v52 = vmul.f32 %v2139_v58, %v1351_v36 }
 0x3de   : > { %v2143_v48 = vpop.eup %2142  ;;  %v1330_v41 = vadd.f32 2.0, %v2141_v19  ;;  %2164 = vpow2.f32 %v1313_v31 }
 0x3df   : > { %v2145_v2 = vpop.eup %2144  ;;  %v1375_v38 = vadd.f32 2.0, %v2750_v37  ;;  %v1402_v61 = vmul.f32 %v2143_v48, %v1354_v9  ;;  %2166 = vrcp.f32 %v1377_v56  ;;  %v1359_v9 = vmul.f32 %v2750_v37, %v2703_v4 }
 0x3e0   : > { %v2147_v62 = vpop.eup %2146  ;;  %v1328_v1 = vadd.f32 2.0, %v2145_v2  ;;  %v1346_v44 = vmul.f32 %v2141_v19, %v1330_v41 }
 0x3e1   : > { %v2149_v15 = vpop.eup %2148  ;;  %v1401_v53 = vmul.f32 %v2147_v62, %v1353_v47  ;;  %2168 = vrcp.f32 %v1375_v38  ;;  %v1361_v62 = vmul.f32 %v2748_v27, %v2699_v59 }
 0x3e2   : > { %v1400_v55 = vmul.f32 %v2149_v15, %v1352_v18  ;;  %v1344_v0 = vmul.f32 %v2145_v2, %v1328_v1  ;;  %v1378_v23 = vadd.f32 2.0, %v1346_v44  ;;  %v1362_v46 = vmul.f32 %v1346_v44, %v2707_v14 }
 0x3e3   : > { %v1416_v12 = vpack.c.bf16 %v1402_v61, %v1401_v53 }
 0x3e4   : > { %v1415_v45 = vpack.c.bf16 %v1400_v55, %v1399_v52  ;;  %v1376_v39 = vadd.f32 2.0, %v1344_v0  ;;  %v2151_v63 = vpop.eup %2150  ;;  %2170 = vrcp.f32 %v1378_v23  ;;  %v1360_v56 = vmul.f32 %v1344_v0, %v2715_v22 }
 0x3e5   : > { %v2153_v16 = vpop.eup %2152  ;;  %v1333_v8 = vadd.f32 2.0, %v2151_v63 }
 0x3e6   : > { %2172 = vrcp.f32 %v1376_v39  ;;  %1882 = vmatprep.mubr.msk.bf16.mxu0 %vm529_vm3, %v1415_v45  ;;  %v2155_v32 = vpop.eup %2154  ;;  %v1405_v29 = vmul.f32 %v2153_v16, %v1357_v13 }
 0x3e7   : > { %1883 = vmatmul.mubr.msk.bf16.vlgmr.msra.gmra.mxu0 %vm529_vm3, %v1416_v12  ;;  %v2157_v40 = vpop.eup %2156  ;;  %v1331_v17 = vadd.f32 2.0, %v2155_v32  ;;  %v1349_v10 = vmul.f32 %v2151_v63, %v1333_v8 }
 0x3e8   : > { %v2159_v34 = vpop.eup %2158  ;;  %v1406_v24 = vmul.f32 %v2157_v40, %v1358_v51 }
 0x3e9   : > { %v2161_v30 = vpop.eup %2160  ;;  %v1347_v42 = vmul.f32 %v2155_v32, %v1331_v17  ;;  %v1403_v20 = vmul.f32 %v2159_v34, %v1355_v60  ;;  %v1381_v31 = vadd.f32 2.0, %v1349_v10  ;;  %v1365_v44 = vmul.f32 %v1349_v10, %v2724_v50 }
 0x3ea   : > { %v2163_v35 = vpop.eup %2162  ;;  %v1334_v49 = vadd.f32 2.0, %v2161_v30  ;;  %v1418_v5 = vpack.c.bf16 %v1406_v24, %v1405_v29 }
 0x3eb   : > { %v2165_v33 = vpop.eup %2164  ;;  %v1404_v58 = vmul.f32 %v2163_v35, %v1356_v54  ;;  %v1379_v25 = vadd.f32 2.0, %v1347_v42  ;;  %v1363_v61 = vmul.f32 %v1347_v42, %v2730_v6 }
 0x3ec   : > { %v1350_v28 = vmul.f32 %v2161_v30, %v1334_v49  ;;  %v1332_v7 = vadd.f32 2.0, %v2165_v33  ;;  %v2167_v57 = vpop.eup %2166 }
 0x3ed   : > { %v1417_v19 = vpack.c.bf16 %v1404_v58, %v1403_v20  ;;  %2174 = vrcp.f32 %v1379_v25  ;;  %v1409_v14 = vmul.f32 %v2167_v57, %v1361_v62 }
 0x3ee   : > { %v1382_v3 = vadd.f32 2.0, %v1350_v28  ;;  %v1348_v43 = vmul.f32 %v2165_v33, %v1332_v7  ;;  %v2169_v48 = vpop.eup %2168  ;;  %v1366_v22 = vmul.f32 %v1350_v28, %v2737_v26  ;;  %v1712_v26 = vld [vmem:[%s2833_s2 + $0x4] ss:$0 sm:$0xff] }
 0x3ef   : > { %1886 = vmatprep.mubr.msk.bf16.mxu0 %vm529_vm3, %v1417_v19  ;;  %v1407_v18 = vmul.f32 %v2169_v48, %v1359_v9 }
 0x3f0   : > { %2176 = vrcp.f32 %v1382_v3  ;;  %v1380_v21 = vadd.f32 2.0, %v1348_v43  ;;  %1887 = vmatmul.mubr.msk.bf16.gmra.mxu0 %vm529_vm3, %v1418_v5  ;;  %v1364_v59 = vmul.f32 %v1348_v43, %v2745_v11 }
 0x3f1   : > { %v2171_v2 = vpop.eup %2170  ;;  %2178 = vrcp.f32 %v1381_v31 }
 0x3f2   : > { %v1410_v36 = vmul.f32 %v2171_v2, %v1362_v46  ;;  %2180 = vrcp.f32 %v1380_v21 }
 0x3f3   : > { %v2173_v41 = vpop.eup %2172 }
 0x3f4   : > { %v1408_v38 = vmul.f32 %v2173_v41, %v1360_v56  ;;  %v1420_v15 = vpack.c.bf16 %v1410_v36, %v1409_v14 }
 0x3f6   : > { %v1419_v1 = vpack.c.bf16 %v1408_v38, %v1407_v18 }
 0x3f8   : > { %1890 = vmatprep.mubr.msk.bf16.mxu0 %vm529_vm3, %v1419_v1 }
 0x3f9   : > { %1891 = vmatmul.mubr.msk.bf16.gmra.mxu0 %vm529_vm3, %v1420_v15 }
 0x3fa   : > { %v2175_v47 = vpop.eup %2174 }
 0x3fb   : > { %v1411_v55 = vmul.f32 %v2175_v47, %v1363_v61 }
 0x3fd   : > { %v2177_v4 = vpop.eup %2176 }
 0x3fe   : > { %v2179_v37 = vpop.eup %2178  ;;  %v1414_v52 = vmul.f32 %v2177_v4, %v1366_v22 }
 0x3ff   : > { %v2181_v27 = vpop.eup %2180  ;;  %v1413_v53 = vmul.f32 %v2179_v37, %v1365_v44 }
 0x400   : > { %v1412_v0 = vmul.f32 %v2181_v27, %v1364_v59 }
 0x401   : > { %v1422_v45 = vpack.c.bf16 %v1414_v52, %v1413_v53 }
 0x402   : > { %v1421_v23 = vpack.c.bf16 %v1412_v0, %v1411_v55 }
 0x404   : > { %1894 = vmatprep.mubr.msk.bf16.mxu0 %vm529_vm3, %v1421_v23 }
 0x405   : > { %1895 = vmatmul.mubr.msk.bf16.gmra.mxu0 %vm529_vm3, %v1422_v45 }
 0x4a7   : > { %v1884_v50 = vpop.f32.mrf.mxu0 }
 0x4a8   : > { %v1527_v6 = vadd.f32 %v1884_v50, %v1712_v26 }
 0x4a9   : > { %v1518_v11 = vpop.f32.mrf.mxu0 }
 0x4aa   : > { %1584 = vst.msk [vmem:[%s2794_s15 + $0x10] sm:$0xff] %vm1581_vm4, %v1527_v6  ;;  %v1519_v39 = vadd.f32 %v1712_v26, %v1518_v11 }
 0x4ab   : > { %v1885_v63 = vpop.f32.mrf.mxu0 }
 0x4ac   : > { %1582 = vst.msk [vmem:[%s2794_s15] sm:$0xff] %vm1581_vm4, %v1519_v39  ;;  %v1530_v12 = vadd.f32 %v1885_v63, %v1712_v26 }
 0x4ad   : > { %v1521_v16 = vpop.f32.mrf.mxu0 }
 0x4ae   : > { %1585 = vst.msk [vmem:[%s2794_s15 + $0x18] sm:$0xff] %vm1581_vm4, %v1530_v12  ;;  %v1522_v8 = vadd.f32 %v1712_v26, %v1521_v16 }
 0x4b0   : > { %1583 = vst.msk [vmem:[%s2794_s15 + $0x8] sm:$0xff] %vm1581_vm4, %v1522_v8  ;;  %v1888_v32 = vpop.f32.mrf.mxu0 }
 0x4b1   : > { %v1543_v40 = vadd.f32 %v1888_v32, %v1712_v26 }
 0x4b2   : > { %v1534_v17 = vpop.f32.mrf.mxu0 }
 0x4b3   : > { %1588 = vst.msk [vmem:[%s2794_s15 + $0x30] sm:$0xff] %vm1581_vm4, %v1543_v40  ;;  %v1535_v34 = vadd.f32 %v1712_v26, %v1534_v17 }
 0x4b4   : > { %v1889_v51 = vpop.f32.mrf.mxu0 }
 0x4b5   : > { %1586 = vst.msk [vmem:[%s2794_s15 + $0x20] sm:$0xff] %vm1581_vm4, %v1535_v34  ;;  %v1546_v30 = vadd.f32 %v1889_v51, %v1712_v26 }
 0x4b6   : > { %v1537_v60 = vpop.f32.mrf.mxu0 }
 0x4b7   : > { %1589 = vst.msk [vmem:[%s2794_s15 + $0x38] sm:$0xff] %vm1581_vm4, %v1546_v30  ;;  %v1538_v54 = vadd.f32 %v1712_v26, %v1537_v60 }
 0x4b9   : > { %v1892_v10 = vpop.f32.mrf.mxu0  ;;  %1587 = vst.msk [vmem:[%s2794_s15 + $0x28] sm:$0xff] %vm1581_vm4, %v1538_v54 }
 0x4ba   : > { %v1559_v42 = vadd.f32 %v1892_v10, %v1712_v26 }
 0x4bb   : > { %v1550_v35 = vpop.f32.mrf.mxu0 }
 0x4bc   : > { %1592 = vst.msk [vmem:[%s2794_s15 + $0x50] sm:$0xff] %vm1581_vm4, %v1559_v42  ;;  %v1551_v13 = vadd.f32 %v1712_v26, %v1550_v35 }
 0x4bd   : > { %v1893_v24 = vpop.f32.mrf.mxu0 }
 0x4be   : > { %1590 = vst.msk [vmem:[%s2794_s15 + $0x40] sm:$0xff] %vm1581_vm4, %v1551_v13  ;;  %v1562_v49 = vadd.f32 %v1893_v24, %v1712_v26 }
 0x4bf   : > { %v1553_v33 = vpop.f32.mrf.mxu0 }
 0x4c0   : > { %1593 = vst.msk [vmem:[%s2794_s15 + $0x58] sm:$0xff] %vm1581_vm4, %v1562_v49  ;;  %v1554_v20 = vadd.f32 %v1712_v26, %v1553_v33 }
 0x4c2   : > { %1591 = vst.msk [vmem:[%s2794_s15 + $0x48] sm:$0xff] %vm1581_vm4, %v1554_v20 }
 0x4c5   : > { %v1896_v58 = vpop.f32.mrf.mxu0 }
 0x4c6   : > { %v1575_v25 = vadd.f32 %v1896_v58, %v1712_v26 }
 0x4c7   : > { %v1566_v29 = vpop.f32.mrf.mxu0 }
 0x4c8   : > { %1596 = vst.msk [vmem:[%s2794_s15 + $0x70] sm:$0xff] %vm1581_vm4, %v1575_v25  ;;  %v1567_v28 = vadd.f32 %v1712_v26, %v1566_v29 }
 0x4c9   : > { %v1897_v7 = vpop.f32.mrf.mxu0 }
 0x4ca   : > { %1594 = vst.msk [vmem:[%s2794_s15 + $0x60] sm:$0xff] %vm1581_vm4, %v1567_v28  ;;  %v1578_v19 = vadd.f32 %v1897_v7, %v1712_v26 }
 0x4cb   : > { %v1569_v31 = vpop.f32.mrf.mxu0 }
 0x4cc   : > { %1597 = vst.msk [vmem:[%s2794_s15 + $0x78] sm:$0xff] %vm1581_vm4, %v1578_v19  ;;  %v1570_v5 = vadd.f32 %v1712_v26, %v1569_v31 }
 0x4ce   : > { %1595 = vst.msk [vmem:[%s2794_s15 + $0x68] sm:$0xff] %vm1581_vm4, %v1570_v5 }
 0x4cf PF: > { %s13_s12 = sadd.s32 1, %s2188_s12  }
 0x4d0   : > { %p10_p4 = scmp.ge.s32.totalorder %s13_s12, 4  }
 0x4d2   :  { %12 = sbr.rel (!%p10_p4) target bundleno = 1 (0x1), region = 62 }

</bundles_post_ra>
